<compile_context>
chip_gen: v6e
topology: v6e:2x2x1
jax: 0.10.0
libtpu: 0.0.40
codegen_flags: <defaults>
</compile_context>

<pallas_src>
import functools
import math

import jax
import jax.numpy as jnp
from jax.experimental import pallas as pl
from jax.experimental.pallas import tpu as pltpu


def _attention_kernel(x_ref, wq_ref, bq_ref, wk_ref, bk_ref, wv_ref, bv_ref,
                      wo_ref, bo_ref, o_ref, ctx_ref, *, num_heads):
    # x_ref: (bt, S, H) bf16   w*_ref: (H, H) bf16   b*_ref: (1, H) f32
    # o_ref: (bt, S, H)        ctx_ref: (bt*S, H) f32 VMEM scratch
    bt, S, H = x_ref.shape
    hd = H // num_heads
    scale = 1.0 / math.sqrt(hd)
    cdt = wq_ref.dtype                       # bf16 compute dtype for the MXU
    M = bt * S

    # Pack (batch, seq) rows onto the matmul M dimension (leading-dim reshape).
    x = x_ref[...].reshape(M, H)

    # Fused QKV projections: bf16 x bf16 -> f32 accumulation, f32 bias add.
    q = jnp.dot(x, wq_ref[...], preferred_element_type=jnp.float32) + bq_ref[...]
    k = jnp.dot(x, wk_ref[...], preferred_element_type=jnp.float32) + bk_ref[...]
    v = jnp.dot(x, wv_ref[...], preferred_element_type=jnp.float32) + bv_ref[...]
    q = q * scale                            # scale q once (not per-head scores)

    # Single cast for the attention matmuls (halves vreg footprint in the loop).
    q = q.astype(cdt)
    k = k.astype(cdt)
    v = v.astype(cdt)

    # Attention per (batch row, head); both loops are tiny and static here.
    # Each head's context goes straight into its slice of the VMEM context
    # buffer so the output projection below is ONE fused (M,H)@(H,H) matmul.
    # TODO(synk): for num_heads >> 8, S >~ 1k, switch to a head-major relayout
    # + lax.fori_loop and a blocked (flash-style) key loop / query-tile grid axis.
    for b in range(bt):
        rows = slice(b * S, (b + 1) * S)
        for h in range(num_heads):
            cols = slice(h * hd, (h + 1) * hd)
            q_bh = q[rows, cols]             # (S, hd) bf16
            k_bh = k[rows, cols]
            v_bh = v[rows, cols]

            # scores = q k^T (contract on last dims, no explicit transpose).
            s = jax.lax.dot_general(q_bh, k_bh, (((1,), (1,)), ((), ())),
                                    preferred_element_type=jnp.float32)  # (S,S)

            # Numerically-stable softmax with deferred normalization (f32).
            m = jnp.max(s, axis=-1, keepdims=True)
            p = jnp.exp(s - m)                              # (S, S) f32
            l = jnp.sum(p, axis=-1, keepdims=True)          # (S, 1) f32

            ctx = jnp.dot(p.astype(cdt), v_bh,
                          preferred_element_type=jnp.float32)            # (S, hd)
            ctx_ref[rows, cols] = ctx * pl.reciprocal(l, approx=True)
            # TODO(synk): attention dropout omitted (eval-mode identity).

    # ONE fused output projection over all rows/heads, then bias.
    out = jnp.dot(ctx_ref[...].astype(cdt), wo_ref[...],
                  preferred_element_type=jnp.float32) + bo_ref[...]
    # TODO(synk): projection dropout omitted (eval-mode identity).
    o_ref[...] = out.reshape(bt, S, H).astype(o_ref.dtype)


def attention_forward(x, wq, bq, wk, bk, wv, bv, wo, bo, *, num_heads,
                      block_b=None, compute_dtype=jnp.bfloat16):
    """x: (B, S, H); w*: (H, H) stored (in, out); b*: (H,).  Returns (B, S, H)."""
    B, S, H = x.shape
    assert H % num_heads == 0, (H, num_heads)

    if block_b is None:
        # Several batch rows per step (lane/sublane utilization at small H) while
        # keeping >= ~4 grid steps so the pipeline can overlap x/out DMAs.
        block_b = max(1, min(8, B // 4))
        while B % block_b:
            block_b -= 1
    assert B % block_b == 0, (B, block_b)
    grid = (B // block_b,)

    out_dtype = x.dtype
    # bf16 MXU operands (f32 accumulation happens inside the kernel); biases
    # stay f32 and are reshaped to (1, H) so they get a lane-dense VMEM tile.
    xc = x.astype(compute_dtype)
    wqc, wkc, wvc, woc = (w.astype(compute_dtype) for w in (wq, wk, wv, wo))
    bq2, bk2, bv2, bo2 = (b.reshape(1, H).astype(jnp.float32)
                          for b in (bq, bk, bv, bo))

    weight_spec = pl.BlockSpec((H, H), lambda i: (0, 0))   # resident across steps
    bias_spec = pl.BlockSpec((1, H), lambda i: (0, 0))
    x_spec = pl.BlockSpec((block_b, S, H), lambda i: (i, 0, 0))
    o_spec = pl.BlockSpec((block_b, S, H), lambda i: (i, 0, 0))

    # Explicit VMEM budget: resident bf16 weights + double-buffered x/out blocks
    # + f32 context scratch + slack; clamped to a safe [32 MiB, 64 MiB] range.
    itemsize_c = jnp.dtype(compute_dtype).itemsize
    weights_bytes = 4 * H * H * itemsize_c + 4 * H * 4
    block_bytes = block_b * S * H * (itemsize_c + jnp.dtype(out_dtype).itemsize)
    scratch_bytes = block_b * S * H * 4
    est = 2 * (weights_bytes + block_bytes) + scratch_bytes + (8 << 20)
    vmem_limit = int(min(64 << 20, max(32 << 20, est)))

    kernel = functools.partial(_attention_kernel, num_heads=num_heads)
    return pl.pallas_call(
        kernel,
        out_shape=jax.ShapeDtypeStruct((B, S, H), out_dtype),
        grid_spec=pltpu.PrefetchScalarGridSpec(
            num_scalar_prefetch=0,
            grid=grid,
            in_specs=[
                x_spec,
                weight_spec, bias_spec,    # Wq, bq
                weight_spec, bias_spec,    # Wk, bk
                weight_spec, bias_spec,    # Wv, bv
                weight_spec, bias_spec,    # Wo, bo
            ],
            out_specs=o_spec,
            scratch_shapes=[pltpu.VMEM((block_b * S, H), jnp.float32)],
        ),
        compiler_params=pltpu.CompilerParams(
            dimension_semantics=("parallel",),
            vmem_limit_bytes=vmem_limit,
        ),
    )(xc, wqc, bq2, wkc, bk2, wvc, bv2, woc, bo2)


if __name__ == "__main__":
    # Small shapes consistent with the module: hidden=32, heads=4, seq=8.
    # B=8 gives the grid 4 pipelined steps of 2 batch rows each.
    B, S, H, NH = 8, 8, 32, 4
    keys = jax.random.split(jax.random.PRNGKey(0), 9)

    x = jax.random.normal(keys[0], (B, S, H), dtype=jnp.float32)
    # Weights stored (in, out) == transposed torch Linear weights; nonzero biases.
    wq = jax.random.normal(keys[1], (H, H), dtype=jnp.float32) * 0.1
    wk = jax.random.normal(keys[2], (H, H), dtype=jnp.float32) * 0.1
    wv = jax.random.normal(keys[3], (H, H), dtype=jnp.float32) * 0.1
    wo = jax.random.normal(keys[4], (H, H), dtype=jnp.float32) * 0.1
    bq = jax.random.normal(keys[5], (H,), dtype=jnp.float32) * 0.1
    bk = jax.random.normal(keys[6], (H,), dtype=jnp.float32) * 0.1
    bv = jax.random.normal(keys[7], (H,), dtype=jnp.float32) * 0.1
    bo = jax.random.normal(keys[8], (H,), dtype=jnp.float32) * 0.1

    out = attention_forward(x, wq, bq, wk, bk, wv, bv, wo, bo, num_heads=NH)
    out = jax.block_until_ready(out)

    # Pure-JAX f32 reference mirroring the PyTorch forward (eval mode).
    def ref_attention(x):
        hd = H // NH
        q = x @ wq + bq
        k = x @ wk + bk
        v = x @ wv + bv

        def split(t):
            return t.reshape(B, S, NH, hd).transpose(0, 2, 1, 3)   # (B, NH, S, hd)

        qh, kh, vh = split(q), split(k), split(v)
        scores = jnp.einsum("bhqd,bhkd->bhqk", qh, kh) / math.sqrt(hd)
        probs = jax.nn.softmax(scores, axis=-1)
        ctx = jnp.einsum("bhqk,bhkd->bhqd", probs, vh)
        ctx = ctx.transpose(0, 2, 1, 3).reshape(B, S, H)
        return ctx @ wo + bo

    ref = ref_attention(x)
    assert out.shape == (B, S, H), out.shape
    max_err = float(jnp.max(jnp.abs(out.astype(jnp.float32) - ref)))
    # bf16 MXU operands -> tolerance loosened vs the f32 reference.
    assert jnp.allclose(out.astype(jnp.float32), ref, atol=5e-2, rtol=5e-2), (
        f"mismatch, max_err={max_err}")

    print("KERNEL_OK")
</pallas_src>

<mosaic_0001>
module attributes {stable_mosaic.version = 11 : i64} {
  func.func @_attention_kernel(%arg0: i32, %arg1: memref<2x8x32xbf16, #tpu.memory_space<vmem>>, %arg2: memref<32x32xbf16, #tpu.memory_space<vmem>>, %arg3: memref<1x32xf32, #tpu.memory_space<vmem>>, %arg4: memref<32x32xbf16, #tpu.memory_space<vmem>>, %arg5: memref<1x32xf32, #tpu.memory_space<vmem>>, %arg6: memref<32x32xbf16, #tpu.memory_space<vmem>>, %arg7: memref<1x32xf32, #tpu.memory_space<vmem>>, %arg8: memref<32x32xbf16, #tpu.memory_space<vmem>>, %arg9: memref<1x32xf32, #tpu.memory_space<vmem>>, %arg10: memref<2x8x32xf32, #tpu.memory_space<vmem>>, %arg11: memref<16x32xf32, #tpu.memory_space<vmem>>) attributes {dimension_semantics = [#tpu.dimension_semantics<parallel>], iteration_bounds = array<i64: 4>, scalar_prefetch = 0 : i64, scratch_operands = 1 : i64, tpu.core_type = #tpu.core_type<tc>, window_params = [{transform_indices = @transform_0, window_bounds = array<i64: 2, 8, 32>}, {pipeline_mode = #tpu.pipeline_mode<synchronous>, transform_indices = @transform_1, window_bounds = array<i64: 32, 32>}, {pipeline_mode = #tpu.pipeline_mode<synchronous>, transform_indices = @transform_2, window_bounds = array<i64: 1, 32>}, {pipeline_mode = #tpu.pipeline_mode<synchronous>, transform_indices = @transform_3, window_bounds = array<i64: 32, 32>}, {pipeline_mode = #tpu.pipeline_mode<synchronous>, transform_indices = @transform_4, window_bounds = array<i64: 1, 32>}, {pipeline_mode = #tpu.pipeline_mode<synchronous>, transform_indices = @transform_5, window_bounds = array<i64: 32, 32>}, {pipeline_mode = #tpu.pipeline_mode<synchronous>, transform_indices = @transform_6, window_bounds = array<i64: 1, 32>}, {pipeline_mode = #tpu.pipeline_mode<synchronous>, transform_indices = @transform_7, window_bounds = array<i64: 32, 32>}, {pipeline_mode = #tpu.pipeline_mode<synchronous>, transform_indices = @transform_8, window_bounds = array<i64: 1, 32>}, {transform_indices = @transform_9, window_bounds = array<i64: 2, 8, 32>}]} {
    %c0 = arith.constant 0 : index
    %c0_0 = arith.constant 0 : index
    %c0_1 = arith.constant 0 : index
    %0 = vector.load %arg1[%c0, %c0_0, %c0_1] : memref<2x8x32xbf16, #tpu.memory_space<vmem>>, vector<2x8x32xbf16>
    %1 = vector.shape_cast %0 : vector<2x8x32xbf16> to vector<16x32xbf16>
    %c0_2 = arith.constant 0 : index
    %c0_3 = arith.constant 0 : index
    %2 = vector.load %arg2[%c0_2, %c0_3] : memref<32x32xbf16, #tpu.memory_space<vmem>>, vector<32x32xbf16>
    %cst = arith.constant dense<0.000000e+00> : vector<16x32xf32>
    %3 = tpu.matmul %1, %2, %cst {dimension_numbers = #tpu.dot_dimension_numbers<[1], [0], [0], [1], [0, 0, 1, 1], [], []>} : vector<16x32xbf16>, vector<32x32xbf16>, vector<16x32xf32> -> vector<16x32xf32>
    %c0_4 = arith.constant 0 : index
    %c0_5 = arith.constant 0 : index
    %4 = vector.load %arg3[%c0_4, %c0_5] : memref<1x32xf32, #tpu.memory_space<vmem>>, vector<1x32xf32>
    %5 = vector.broadcast %4 : vector<1x32xf32> to vector<16x32xf32>
    %6 = arith.addf %3, %5 : vector<16x32xf32>
    %c0_6 = arith.constant 0 : index
    %c0_7 = arith.constant 0 : index
    %7 = vector.load %arg4[%c0_6, %c0_7] : memref<32x32xbf16, #tpu.memory_space<vmem>>, vector<32x32xbf16>
    %cst_8 = arith.constant dense<0.000000e+00> : vector<16x32xf32>
    %8 = tpu.matmul %1, %7, %cst_8 {dimension_numbers = #tpu.dot_dimension_numbers<[1], [0], [0], [1], [0, 0, 1, 1], [], []>} : vector<16x32xbf16>, vector<32x32xbf16>, vector<16x32xf32> -> vector<16x32xf32>
    %c0_9 = arith.constant 0 : index
    %c0_10 = arith.constant 0 : index
    %9 = vector.load %arg5[%c0_9, %c0_10] : memref<1x32xf32, #tpu.memory_space<vmem>>, vector<1x32xf32>
    %10 = vector.broadcast %9 : vector<1x32xf32> to vector<16x32xf32>
    %11 = arith.addf %8, %10 : vector<16x32xf32>
    %c0_11 = arith.constant 0 : index
    %c0_12 = arith.constant 0 : index
    %12 = vector.load %arg6[%c0_11, %c0_12] : memref<32x32xbf16, #tpu.memory_space<vmem>>, vector<32x32xbf16>
    %cst_13 = arith.constant dense<0.000000e+00> : vector<16x32xf32>
    %13 = tpu.matmul %1, %12, %cst_13 {dimension_numbers = #tpu.dot_dimension_numbers<[1], [0], [0], [1], [0, 0, 1, 1], [], []>} : vector<16x32xbf16>, vector<32x32xbf16>, vector<16x32xf32> -> vector<16x32xf32>
    %c0_14 = arith.constant 0 : index
    %c0_15 = arith.constant 0 : index
    %14 = vector.load %arg7[%c0_14, %c0_15] : memref<1x32xf32, #tpu.memory_space<vmem>>, vector<1x32xf32>
    %15 = vector.broadcast %14 : vector<1x32xf32> to vector<16x32xf32>
    %16 = arith.addf %13, %15 : vector<16x32xf32>
    %cst_16 = arith.constant 0.353553385 : f32
    %17 = vector.broadcast %cst_16 : f32 to vector<16x32xf32>
    %18 = arith.mulf %6, %17 : vector<16x32xf32>
    %19 = arith.truncf %18 : vector<16x32xf32> to vector<16x32xbf16>
    %20 = arith.truncf %11 : vector<16x32xf32> to vector<16x32xbf16>
    %21 = arith.truncf %16 : vector<16x32xf32> to vector<16x32xbf16>
    %22 = vector.extract_strided_slice %19 {offsets = [0, 0], sizes = [8, 8], strides = [1, 1]} : vector<16x32xbf16> to vector<8x8xbf16>
    %23 = vector.extract_strided_slice %20 {offsets = [0, 0], sizes = [8, 8], strides = [1, 1]} : vector<16x32xbf16> to vector<8x8xbf16>
    %24 = vector.extract_strided_slice %21 {offsets = [0, 0], sizes = [8, 8], strides = [1, 1]} : vector<16x32xbf16> to vector<8x8xbf16>
    %cst_17 = arith.constant dense<0.000000e+00> : vector<8x8xf32>
    %25 = tpu.matmul %22, %23, %cst_17 {dimension_numbers = #tpu.dot_dimension_numbers<[1], [1], [0], [0], [0, 0, 1, 0], [], []>} : vector<8x8xbf16>, vector<8x8xbf16>, vector<8x8xf32> -> vector<8x8xf32>
    %cst_18 = arith.constant dense<0xFF800000> : vector<8xf32>
    %26 = vector.multi_reduction <maximumf>, %25, %cst_18 [1] : vector<8x8xf32> to vector<8xf32>
    %27 = vector.shape_cast %26 : vector<8xf32> to vector<8x1xf32>
    %28 = vector.broadcast %27 : vector<8x1xf32> to vector<8x8xf32>
    %29 = arith.subf %25, %28 : vector<8x8xf32>
    %30 = math.exp %29 : vector<8x8xf32>
    %cst_19 = arith.constant dense<0.000000e+00> : vector<8xf32>
    %31 = vector.multi_reduction <add>, %30, %cst_19 [1] : vector<8x8xf32> to vector<8xf32>
    %32 = vector.shape_cast %31 : vector<8xf32> to vector<8x1xf32>
    %33 = arith.truncf %30 : vector<8x8xf32> to vector<8x8xbf16>
    %cst_20 = arith.constant dense<0.000000e+00> : vector<8x8xf32>
    %34 = tpu.matmul %33, %24, %cst_20 {dimension_numbers = #tpu.dot_dimension_numbers<[1], [0], [0], [1], [0, 0, 1, 1], [], []>} : vector<8x8xbf16>, vector<8x8xbf16>, vector<8x8xf32> -> vector<8x8xf32>
    %35 = tpu.reciprocal %32 {approx = true} : vector<8x1xf32> -> vector<8x1xf32>
    %36 = vector.broadcast %35 : vector<8x1xf32> to vector<8x8xf32>
    %37 = arith.mulf %34, %36 : vector<8x8xf32>
    %c0_21 = arith.constant 0 : index
    %c0_22 = arith.constant 0 : index
    %38 = vector.load %arg11[%c0_21, %c0_22] : memref<16x32xf32, #tpu.memory_space<vmem>>, vector<8x8xf32>
    tpu.vector_store %arg11[%c0_21, %c0_22], %37 {strides = array<i32>} : memref<16x32xf32, #tpu.memory_space<vmem>>, vector<8x8xf32>,
    %39 = vector.extract_strided_slice %19 {offsets = [0, 8], sizes = [8, 8], strides = [1, 1]} : vector<16x32xbf16> to vector<8x8xbf16>
    %40 = vector.extract_strided_slice %20 {offsets = [0, 8], sizes = [8, 8], strides = [1, 1]} : vector<16x32xbf16> to vector<8x8xbf16>
    %41 = vector.extract_strided_slice %21 {offsets = [0, 8], sizes = [8, 8], strides = [1, 1]} : vector<16x32xbf16> to vector<8x8xbf16>
    %cst_23 = arith.constant dense<0.000000e+00> : vector<8x8xf32>
    %42 = tpu.matmul %39, %40, %cst_23 {dimension_numbers = #tpu.dot_dimension_numbers<[1], [1], [0], [0], [0, 0, 1, 0], [], []>} : vector<8x8xbf16>, vector<8x8xbf16>, vector<8x8xf32> -> vector<8x8xf32>
    %cst_24 = arith.constant dense<0xFF800000> : vector<8xf32>
    %43 = vector.multi_reduction <maximumf>, %42, %cst_24 [1] : vector<8x8xf32> to vector<8xf32>
    %44 = vector.shape_cast %43 : vector<8xf32> to vector<8x1xf32>
    %45 = vector.broadcast %44 : vector<8x1xf32> to vector<8x8xf32>
    %46 = arith.subf %42, %45 : vector<8x8xf32>
    %47 = math.exp %46 : vector<8x8xf32>
    %cst_25 = arith.constant dense<0.000000e+00> : vector<8xf32>
    %48 = vector.multi_reduction <add>, %47, %cst_25 [1] : vector<8x8xf32> to vector<8xf32>
    %49 = vector.shape_cast %48 : vector<8xf32> to vector<8x1xf32>
    %50 = arith.truncf %47 : vector<8x8xf32> to vector<8x8xbf16>
    %cst_26 = arith.constant dense<0.000000e+00> : vector<8x8xf32>
    %51 = tpu.matmul %50, %41, %cst_26 {dimension_numbers = #tpu.dot_dimension_numbers<[1], [0], [0], [1], [0, 0, 1, 1], [], []>} : vector<8x8xbf16>, vector<8x8xbf16>, vector<8x8xf32> -> vector<8x8xf32>
    %52 = tpu.reciprocal %49 {approx = true} : vector<8x1xf32> -> vector<8x1xf32>
    %53 = vector.broadcast %52 : vector<8x1xf32> to vector<8x8xf32>
    %54 = arith.mulf %51, %53 : vector<8x8xf32>
    %c0_27 = arith.constant 0 : index
    %c8 = arith.constant 8 : index
    %55 = vector.load %arg11[%c0_27, %c8] : memref<16x32xf32, #tpu.memory_space<vmem>>, vector<8x8xf32>
    tpu.vector_store %arg11[%c0_27, %c8], %54 {strides = array<i32>} : memref<16x32xf32, #tpu.memory_space<vmem>>, vector<8x8xf32>,
    %56 = vector.extract_strided_slice %19 {offsets = [0, 16], sizes = [8, 8], strides = [1, 1]} : vector<16x32xbf16> to vector<8x8xbf16>
    %57 = vector.extract_strided_slice %20 {offsets = [0, 16], sizes = [8, 8], strides = [1, 1]} : vector<16x32xbf16> to vector<8x8xbf16>
    %58 = vector.extract_strided_slice %21 {offsets = [0, 16], sizes = [8, 8], strides = [1, 1]} : vector<16x32xbf16> to vector<8x8xbf16>
    %cst_28 = arith.constant dense<0.000000e+00> : vector<8x8xf32>
    %59 = tpu.matmul %56, %57, %cst_28 {dimension_numbers = #tpu.dot_dimension_numbers<[1], [1], [0], [0], [0, 0, 1, 0], [], []>} : vector<8x8xbf16>, vector<8x8xbf16>, vector<8x8xf32> -> vector<8x8xf32>
    %cst_29 = arith.constant dense<0xFF800000> : vector<8xf32>
    %60 = vector.multi_reduction <maximumf>, %59, %cst_29 [1] : vector<8x8xf32> to vector<8xf32>
    %61 = vector.shape_cast %60 : vector<8xf32> to vector<8x1xf32>
    %62 = vector.broadcast %61 : vector<8x1xf32> to vector<8x8xf32>
    %63 = arith.subf %59, %62 : vector<8x8xf32>
    %64 = math.exp %63 : vector<8x8xf32>
    %cst_30 = arith.constant dense<0.000000e+00> : vector<8xf32>
    %65 = vector.multi_reduction <add>, %64, %cst_30 [1] : vector<8x8xf32> to vector<8xf32>
    %66 = vector.shape_cast %65 : vector<8xf32> to vector<8x1xf32>
    %67 = arith.truncf %64 : vector<8x8xf32> to vector<8x8xbf16>
    %cst_31 = arith.constant dense<0.000000e+00> : vector<8x8xf32>
    %68 = tpu.matmul %67, %58, %cst_31 {dimension_numbers = #tpu.dot_dimension_numbers<[1], [0], [0], [1], [0, 0, 1, 1], [], []>} : vector<8x8xbf16>, vector<8x8xbf16>, vector<8x8xf32> -> vector<8x8xf32>
    %69 = tpu.reciprocal %66 {approx = true} : vector<8x1xf32> -> vector<8x1xf32>
    %70 = vector.broadcast %69 : vector<8x1xf32> to vector<8x8xf32>
    %71 = arith.mulf %68, %70 : vector<8x8xf32>
    %c0_32 = arith.constant 0 : index
    %c16 = arith.constant 16 : index
    %72 = vector.load %arg11[%c0_32, %c16] : memref<16x32xf32, #tpu.memory_space<vmem>>, vector<8x8xf32>
    tpu.vector_store %arg11[%c0_32, %c16], %71 {strides = array<i32>} : memref<16x32xf32, #tpu.memory_space<vmem>>, vector<8x8xf32>,
    %73 = vector.extract_strided_slice %19 {offsets = [0, 24], sizes = [8, 8], strides = [1, 1]} : vector<16x32xbf16> to vector<8x8xbf16>
    %74 = vector.extract_strided_slice %20 {offsets = [0, 24], sizes = [8, 8], strides = [1, 1]} : vector<16x32xbf16> to vector<8x8xbf16>
    %75 = vector.extract_strided_slice %21 {offsets = [0, 24], sizes = [8, 8], strides = [1, 1]} : vector<16x32xbf16> to vector<8x8xbf16>
    %cst_33 = arith.constant dense<0.000000e+00> : vector<8x8xf32>
    %76 = tpu.matmul %73, %74, %cst_33 {dimension_numbers = #tpu.dot_dimension_numbers<[1], [1], [0], [0], [0, 0, 1, 0], [], []>} : vector<8x8xbf16>, vector<8x8xbf16>, vector<8x8xf32> -> vector<8x8xf32>
    %cst_34 = arith.constant dense<0xFF800000> : vector<8xf32>
    %77 = vector.multi_reduction <maximumf>, %76, %cst_34 [1] : vector<8x8xf32> to vector<8xf32>
    %78 = vector.shape_cast %77 : vector<8xf32> to vector<8x1xf32>
    %79 = vector.broadcast %78 : vector<8x1xf32> to vector<8x8xf32>
    %80 = arith.subf %76, %79 : vector<8x8xf32>
    %81 = math.exp %80 : vector<8x8xf32>
    %cst_35 = arith.constant dense<0.000000e+00> : vector<8xf32>
    %82 = vector.multi_reduction <add>, %81, %cst_35 [1] : vector<8x8xf32> to vector<8xf32>
    %83 = vector.shape_cast %82 : vector<8xf32> to vector<8x1xf32>
    %84 = arith.truncf %81 : vector<8x8xf32> to vector<8x8xbf16>
    %cst_36 = arith.constant dense<0.000000e+00> : vector<8x8xf32>
    %85 = tpu.matmul %84, %75, %cst_36 {dimension_numbers = #tpu.dot_dimension_numbers<[1], [0], [0], [1], [0, 0, 1, 1], [], []>} : vector<8x8xbf16>, vector<8x8xbf16>, vector<8x8xf32> -> vector<8x8xf32>
    %86 = tpu.reciprocal %83 {approx = true} : vector<8x1xf32> -> vector<8x1xf32>
    %87 = vector.broadcast %86 : vector<8x1xf32> to vector<8x8xf32>
    %88 = arith.mulf %85, %87 : vector<8x8xf32>
    %c0_37 = arith.constant 0 : index
    %c24 = arith.constant 24 : index
    %89 = vector.load %arg11[%c0_37, %c24] : memref<16x32xf32, #tpu.memory_space<vmem>>, vector<8x8xf32>
    tpu.vector_store %arg11[%c0_37, %c24], %88 {strides = array<i32>} : memref<16x32xf32, #tpu.memory_space<vmem>>, vector<8x8xf32>,
    %90 = vector.extract_strided_slice %19 {offsets = [8, 0], sizes = [8, 8], strides = [1, 1]} : vector<16x32xbf16> to vector<8x8xbf16>
    %91 = vector.extract_strided_slice %20 {offsets = [8, 0], sizes = [8, 8], strides = [1, 1]} : vector<16x32xbf16> to vector<8x8xbf16>
    %92 = vector.extract_strided_slice %21 {offsets = [8, 0], sizes = [8, 8], strides = [1, 1]} : vector<16x32xbf16> to vector<8x8xbf16>
    %cst_38 = arith.constant dense<0.000000e+00> : vector<8x8xf32>
    %93 = tpu.matmul %90, %91, %cst_38 {dimension_numbers = #tpu.dot_dimension_numbers<[1], [1], [0], [0], [0, 0, 1, 0], [], []>} : vector<8x8xbf16>, vector<8x8xbf16>, vector<8x8xf32> -> vector<8x8xf32>
    %cst_39 = arith.constant dense<0xFF800000> : vector<8xf32>
    %94 = vector.multi_reduction <maximumf>, %93, %cst_39 [1] : vector<8x8xf32> to vector<8xf32>
    %95 = vector.shape_cast %94 : vector<8xf32> to vector<8x1xf32>
    %96 = vector.broadcast %95 : vector<8x1xf32> to vector<8x8xf32>
    %97 = arith.subf %93, %96 : vector<8x8xf32>
    %98 = math.exp %97 : vector<8x8xf32>
    %cst_40 = arith.constant dense<0.000000e+00> : vector<8xf32>
    %99 = vector.multi_reduction <add>, %98, %cst_40 [1] : vector<8x8xf32> to vector<8xf32>
    %100 = vector.shape_cast %99 : vector<8xf32> to vector<8x1xf32>
    %101 = arith.truncf %98 : vector<8x8xf32> to vector<8x8xbf16>
    %cst_41 = arith.constant dense<0.000000e+00> : vector<8x8xf32>
    %102 = tpu.matmul %101, %92, %cst_41 {dimension_numbers = #tpu.dot_dimension_numbers<[1], [0], [0], [1], [0, 0, 1, 1], [], []>} : vector<8x8xbf16>, vector<8x8xbf16>, vector<8x8xf32> -> vector<8x8xf32>
    %103 = tpu.reciprocal %100 {approx = true} : vector<8x1xf32> -> vector<8x1xf32>
    %104 = vector.broadcast %103 : vector<8x1xf32> to vector<8x8xf32>
    %105 = arith.mulf %102, %104 : vector<8x8xf32>
    %c8_42 = arith.constant 8 : index
    %c0_43 = arith.constant 0 : index
    %106 = vector.load %arg11[%c8_42, %c0_43] : memref<16x32xf32, #tpu.memory_space<vmem>>, vector<8x8xf32>
    tpu.vector_store %arg11[%c8_42, %c0_43], %105 {strides = array<i32>} : memref<16x32xf32, #tpu.memory_space<vmem>>, vector<8x8xf32>,
    %107 = vector.extract_strided_slice %19 {offsets = [8, 8], sizes = [8, 8], strides = [1, 1]} : vector<16x32xbf16> to vector<8x8xbf16>
    %108 = vector.extract_strided_slice %20 {offsets = [8, 8], sizes = [8, 8], strides = [1, 1]} : vector<16x32xbf16> to vector<8x8xbf16>
    %109 = vector.extract_strided_slice %21 {offsets = [8, 8], sizes = [8, 8], strides = [1, 1]} : vector<16x32xbf16> to vector<8x8xbf16>
    %cst_44 = arith.constant dense<0.000000e+00> : vector<8x8xf32>
    %110 = tpu.matmul %107, %108, %cst_44 {dimension_numbers = #tpu.dot_dimension_numbers<[1], [1], [0], [0], [0, 0, 1, 0], [], []>} : vector<8x8xbf16>, vector<8x8xbf16>, vector<8x8xf32> -> vector<8x8xf32>
    %cst_45 = arith.constant dense<0xFF800000> : vector<8xf32>
    %111 = vector.multi_reduction <maximumf>, %110, %cst_45 [1] : vector<8x8xf32> to vector<8xf32>
    %112 = vector.shape_cast %111 : vector<8xf32> to vector<8x1xf32>
    %113 = vector.broadcast %112 : vector<8x1xf32> to vector<8x8xf32>
    %114 = arith.subf %110, %113 : vector<8x8xf32>
    %115 = math.exp %114 : vector<8x8xf32>
    %cst_46 = arith.constant dense<0.000000e+00> : vector<8xf32>
    %116 = vector.multi_reduction <add>, %115, %cst_46 [1] : vector<8x8xf32> to vector<8xf32>
    %117 = vector.shape_cast %116 : vector<8xf32> to vector<8x1xf32>
    %118 = arith.truncf %115 : vector<8x8xf32> to vector<8x8xbf16>
    %cst_47 = arith.constant dense<0.000000e+00> : vector<8x8xf32>
    %119 = tpu.matmul %118, %109, %cst_47 {dimension_numbers = #tpu.dot_dimension_numbers<[1], [0], [0], [1], [0, 0, 1, 1], [], []>} : vector<8x8xbf16>, vector<8x8xbf16>, vector<8x8xf32> -> vector<8x8xf32>
    %120 = tpu.reciprocal %117 {approx = true} : vector<8x1xf32> -> vector<8x1xf32>
    %121 = vector.broadcast %120 : vector<8x1xf32> to vector<8x8xf32>
    %122 = arith.mulf %119, %121 : vector<8x8xf32>
    %c8_48 = arith.constant 8 : index
    %c8_49 = arith.constant 8 : index
    %123 = vector.load %arg11[%c8_48, %c8_49] : memref<16x32xf32, #tpu.memory_space<vmem>>, vector<8x8xf32>
    tpu.vector_store %arg11[%c8_48, %c8_49], %122 {strides = array<i32>} : memref<16x32xf32, #tpu.memory_space<vmem>>, vector<8x8xf32>,
    %124 = vector.extract_strided_slice %19 {offsets = [8, 16], sizes = [8, 8], strides = [1, 1]} : vector<16x32xbf16> to vector<8x8xbf16>
    %125 = vector.extract_strided_slice %20 {offsets = [8, 16], sizes = [8, 8], strides = [1, 1]} : vector<16x32xbf16> to vector<8x8xbf16>
    %126 = vector.extract_strided_slice %21 {offsets = [8, 16], sizes = [8, 8], strides = [1, 1]} : vector<16x32xbf16> to vector<8x8xbf16>
    %cst_50 = arith.constant dense<0.000000e+00> : vector<8x8xf32>
    %127 = tpu.matmul %124, %125, %cst_50 {dimension_numbers = #tpu.dot_dimension_numbers<[1], [1], [0], [0], [0, 0, 1, 0], [], []>} : vector<8x8xbf16>, vector<8x8xbf16>, vector<8x8xf32> -> vector<8x8xf32>
    %cst_51 = arith.constant dense<0xFF800000> : vector<8xf32>
    %128 = vector.multi_reduction <maximumf>, %127, %cst_51 [1] : vector<8x8xf32> to vector<8xf32>
    %129 = vector.shape_cast %128 : vector<8xf32> to vector<8x1xf32>
    %130 = vector.broadcast %129 : vector<8x1xf32> to vector<8x8xf32>
    %131 = arith.subf %127, %130 : vector<8x8xf32>
    %132 = math.exp %131 : vector<8x8xf32>
    %cst_52 = arith.constant dense<0.000000e+00> : vector<8xf32>
    %133 = vector.multi_reduction <add>, %132, %cst_52 [1] : vector<8x8xf32> to vector<8xf32>
    %134 = vector.shape_cast %133 : vector<8xf32> to vector<8x1xf32>
    %135 = arith.truncf %132 : vector<8x8xf32> to vector<8x8xbf16>
    %cst_53 = arith.constant dense<0.000000e+00> : vector<8x8xf32>
    %136 = tpu.matmul %135, %126, %cst_53 {dimension_numbers = #tpu.dot_dimension_numbers<[1], [0], [0], [1], [0, 0, 1, 1], [], []>} : vector<8x8xbf16>, vector<8x8xbf16>, vector<8x8xf32> -> vector<8x8xf32>
    %137 = tpu.reciprocal %134 {approx = true} : vector<8x1xf32> -> vector<8x1xf32>
    %138 = vector.broadcast %137 : vector<8x1xf32> to vector<8x8xf32>
    %139 = arith.mulf %136, %138 : vector<8x8xf32>
    %c8_54 = arith.constant 8 : index
    %c16_55 = arith.constant 16 : index
    %140 = vector.load %arg11[%c8_54, %c16_55] : memref<16x32xf32, #tpu.memory_space<vmem>>, vector<8x8xf32>
    tpu.vector_store %arg11[%c8_54, %c16_55], %139 {strides = array<i32>} : memref<16x32xf32, #tpu.memory_space<vmem>>, vector<8x8xf32>,
    %141 = vector.extract_strided_slice %19 {offsets = [8, 24], sizes = [8, 8], strides = [1, 1]} : vector<16x32xbf16> to vector<8x8xbf16>
    %142 = vector.extract_strided_slice %20 {offsets = [8, 24], sizes = [8, 8], strides = [1, 1]} : vector<16x32xbf16> to vector<8x8xbf16>
    %143 = vector.extract_strided_slice %21 {offsets = [8, 24], sizes = [8, 8], strides = [1, 1]} : vector<16x32xbf16> to vector<8x8xbf16>
    %cst_56 = arith.constant dense<0.000000e+00> : vector<8x8xf32>
    %144 = tpu.matmul %141, %142, %cst_56 {dimension_numbers = #tpu.dot_dimension_numbers<[1], [1], [0], [0], [0, 0, 1, 0], [], []>} : vector<8x8xbf16>, vector<8x8xbf16>, vector<8x8xf32> -> vector<8x8xf32>
    %cst_57 = arith.constant dense<0xFF800000> : vector<8xf32>
    %145 = vector.multi_reduction <maximumf>, %144, %cst_57 [1] : vector<8x8xf32> to vector<8xf32>
    %146 = vector.shape_cast %145 : vector<8xf32> to vector<8x1xf32>
    %147 = vector.broadcast %146 : vector<8x1xf32> to vector<8x8xf32>
    %148 = arith.subf %144, %147 : vector<8x8xf32>
    %149 = math.exp %148 : vector<8x8xf32>
    %cst_58 = arith.constant dense<0.000000e+00> : vector<8xf32>
    %150 = vector.multi_reduction <add>, %149, %cst_58 [1] : vector<8x8xf32> to vector<8xf32>
    %151 = vector.shape_cast %150 : vector<8xf32> to vector<8x1xf32>
    %152 = arith.truncf %149 : vector<8x8xf32> to vector<8x8xbf16>
    %cst_59 = arith.constant dense<0.000000e+00> : vector<8x8xf32>
    %153 = tpu.matmul %152, %143, %cst_59 {dimension_numbers = #tpu.dot_dimension_numbers<[1], [0], [0], [1], [0, 0, 1, 1], [], []>} : vector<8x8xbf16>, vector<8x8xbf16>, vector<8x8xf32> -> vector<8x8xf32>
    %154 = tpu.reciprocal %151 {approx = true} : vector<8x1xf32> -> vector<8x1xf32>
    %155 = vector.broadcast %154 : vector<8x1xf32> to vector<8x8xf32>
    %156 = arith.mulf %153, %155 : vector<8x8xf32>
    %c8_60 = arith.constant 8 : index
    %c24_61 = arith.constant 24 : index
    %157 = vector.load %arg11[%c8_60, %c24_61] : memref<16x32xf32, #tpu.memory_space<vmem>>, vector<8x8xf32>
    tpu.vector_store %arg11[%c8_60, %c24_61], %156 {strides = array<i32>} : memref<16x32xf32, #tpu.memory_space<vmem>>, vector<8x8xf32>,
    %c0_62 = arith.constant 0 : index
    %c0_63 = arith.constant 0 : index
    %158 = vector.load %arg11[%c0_62, %c0_63] : memref<16x32xf32, #tpu.memory_space<vmem>>, vector<16x32xf32>
    %159 = arith.truncf %158 : vector<16x32xf32> to vector<16x32xbf16>
    %c0_64 = arith.constant 0 : index
    %c0_65 = arith.constant 0 : index
    %160 = vector.load %arg8[%c0_64, %c0_65] : memref<32x32xbf16, #tpu.memory_space<vmem>>, vector<32x32xbf16>
    %cst_66 = arith.constant dense<0.000000e+00> : vector<16x32xf32>
    %161 = tpu.matmul %159, %160, %cst_66 {dimension_numbers = #tpu.dot_dimension_numbers<[1], [0], [0], [1], [0, 0, 1, 1], [], []>} : vector<16x32xbf16>, vector<32x32xbf16>, vector<16x32xf32> -> vector<16x32xf32>
    %c0_67 = arith.constant 0 : index
    %c0_68 = arith.constant 0 : index
    %162 = vector.load %arg9[%c0_67, %c0_68] : memref<1x32xf32, #tpu.memory_space<vmem>>, vector<1x32xf32>
    %163 = vector.broadcast %162 : vector<1x32xf32> to vector<16x32xf32>
    %164 = arith.addf %161, %163 : vector<16x32xf32>
    %165 = vector.shape_cast %164 : vector<16x32xf32> to vector<2x8x32xf32>
    %c0_69 = arith.constant 0 : index
    %c0_70 = arith.constant 0 : index
    %c0_71 = arith.constant 0 : index
    %166 = vector.load %arg10[%c0_69, %c0_70, %c0_71] : memref<2x8x32xf32, #tpu.memory_space<vmem>>, vector<2x8x32xf32>
    tpu.vector_store %arg10[%c0_69, %c0_70, %c0_71], %165 {strides = array<i32>} : memref<2x8x32xf32, #tpu.memory_space<vmem>>, vector<2x8x32xf32>,
    return
  }
  func.func @transform_0(%arg0: i32) -> (i32, i32, i32) {
    %c0_i32 = arith.constant 0 : i32
    %c0_i32_0 = arith.constant 0 : i32
    %c0_i32_1 = arith.constant 0 : i32
    return %arg0, %c0_i32, %c0_i32_0 : i32, i32, i32
  }
  func.func @transform_1(%arg0: i32) -> (i32, i32) {
    %c0_i32 = arith.constant 0 : i32
    %c0_i32_0 = arith.constant 0 : i32
    %c0_i32_1 = arith.constant 0 : i32
    return %c0_i32, %c0_i32_0 : i32, i32
  }
  func.func @transform_2(%arg0: i32) -> (i32, i32) {
    %c0_i32 = arith.constant 0 : i32
    %c0_i32_0 = arith.constant 0 : i32
    %c0_i32_1 = arith.constant 0 : i32
    return %c0_i32, %c0_i32_0 : i32, i32
  }
  func.func @transform_3(%arg0: i32) -> (i32, i32) {
    %c0_i32 = arith.constant 0 : i32
    %c0_i32_0 = arith.constant 0 : i32
    %c0_i32_1 = arith.constant 0 : i32
    return %c0_i32, %c0_i32_0 : i32, i32
  }
  func.func @transform_4(%arg0: i32) -> (i32, i32) {
    %c0_i32 = arith.constant 0 : i32
    %c0_i32_0 = arith.constant 0 : i32
    %c0_i32_1 = arith.constant 0 : i32
    return %c0_i32, %c0_i32_0 : i32, i32
  }
  func.func @transform_5(%arg0: i32) -> (i32, i32) {
    %c0_i32 = arith.constant 0 : i32
    %c0_i32_0 = arith.constant 0 : i32
    %c0_i32_1 = arith.constant 0 : i32
    return %c0_i32, %c0_i32_0 : i32, i32
  }
  func.func @transform_6(%arg0: i32) -> (i32, i32) {
    %c0_i32 = arith.constant 0 : i32
    %c0_i32_0 = arith.constant 0 : i32
    %c0_i32_1 = arith.constant 0 : i32
    return %c0_i32, %c0_i32_0 : i32, i32
  }
  func.func @transform_7(%arg0: i32) -> (i32, i32) {
    %c0_i32 = arith.constant 0 : i32
    %c0_i32_0 = arith.constant 0 : i32
    %c0_i32_1 = arith.constant 0 : i32
    return %c0_i32, %c0_i32_0 : i32, i32
  }
  func.func @transform_8(%arg0: i32) -> (i32, i32) {
    %c0_i32 = arith.constant 0 : i32
    %c0_i32_0 = arith.constant 0 : i32
    %c0_i32_1 = arith.constant 0 : i32
    return %c0_i32, %c0_i32_0 : i32, i32
  }
  func.func @transform_9(%arg0: i32) -> (i32, i32, i32) {
    %c0_i32 = arith.constant 0 : i32
    %c0_i32_0 = arith.constant 0 : i32
    %c0_i32_1 = arith.constant 0 : i32
    return %arg0, %c0_i32, %c0_i32_0 : i32, i32, i32
  }
}

</mosaic_0001>

<bundles_post_ra>
// kernel: tpu_custom_call.1
= control target key start
LH: loop header
LB: loop body
LE: loop exit
PB: predicated region body
PF: predicated region fallthrough
CT: control target
= control target key end

     0   :  { %s2774_s0 = inlined_call_operand.hbm [shape: bf16[8,8,32], index: 0, kind: input, shape index: {}]   ;;  %s2775_s1 = inlined_call_operand.hbm [shape: bf16[32,32], index: 1, kind: input, shape index: {}]   ;;  %s2776_s2 = inlined_call_operand.vmem [shape: f32[1,32], index: 2, kind: input, shape index: {}]   ;;  %s2777_s3 = inlined_call_operand.hbm [shape: bf16[32,32], index: 3, kind: input, shape index: {}]   ;;  %s2778_s4 = inlined_call_operand.vmem [shape: f32[1,32], index: 4, kind: input, shape index: {}]   ;;  %s2779_s5 = inlined_call_operand.hbm [shape: bf16[32,32], index: 5, kind: input, shape index: {}]   ;;  %s2780_s6 = inlined_call_operand.vmem [shape: f32[1,32], index: 6, kind: input, shape index: {}]   ;;  %s2781_s7 = inlined_call_operand.hbm [shape: bf16[32,32], index: 7, kind: input, shape index: {}]   ;;  %s2782_s8 = inlined_call_operand.vmem [shape: f32[1,32], index: 8, kind: input, shape index: {}]   ;;  %s2783_s9 = inlined_call_operand.hbm [shape: f32[8,8,32], index: 9, kind: output, shape index: {}]  }
   0x1   :  { %2790 = sst [smem:[#allocation17_spill]] %s2775_s1 }
   0x2   :  { %2791 = sst [smem:[#allocation18_spill]] %s2777_s3 }
   0x3   :  { %2792 = sst [smem:[#allocation19_spill]] %s2779_s5 }
   0x4   :  { %14 = vsyncpa [#allocation4], 0 }
   0x5   :  { %16 = vsyncpa [#allocation4 + $0x1], 0 }
   0x6   :  { %17 = vsyncpa [#allocation7], 0 }
   0x7   :  { %18 = vsyncpa [#allocation10], 0 }
   0x8   :  { %19 = vsyncpa [#allocation5], 0 }
   0x9   :  { %21 = vsyncpa [#allocation5 + $0x1], 0  ;;  %s2369_s30 = smov 0   ;;  %s2371_s10 = smov 0  }
   0xa   :  { %s2373_s11 = smov 0   ;;  %s2375_s12 = smov 0  }
   0xb LB: > { %s2390_s13 = sadd.s32 4294967295, %s2300_s12   ;;  %s1728_s14 = sadd.s32 4294967294, %s2300_s12   ;;  %s2300_s12 = sphi %s2375_s12, %s2815_s12   ;;  %s2296_s11 = sphi %s2373_s11, %s2814_s11   ;;  %s2292_s10 = sphi %s2371_s10, %s2813_s10   ;;  %s2288_s30 = sphi %s2369_s30, %s2812_s30  }
   0xc   : > { %p47_p0 = scmp.ne.s32.totalorder %s2292_s10, %s2288_s30  ;;  %p2784_p1 = scmp.eq.s32.totalorder %s2390_s13, 0 }
   0xd   : > { %p239_p2 = scmp.eq.s32.totalorder %s2390_s13, 3  ;;  %p245_p3 = scmp.eq.s32.totalorder %s1728_s14, 3 }
   0xe   : > { %p2399_p4 = por %p2784_p1, %p47_p0  ;;  %p1729_p5 = scmp.ge.s32.totalorder %s2300_s12, 1 }
   0xf   : > { %p2404_p6 = por %p245_p3, %p47_p0  ;;  %p252_p7 = scmp.lt.s32.totalorder %s2300_s12, 5 }
  0x10   : > { %s2793_s15 = scalar_select %p2399_p4, 1, 0 }
  0x11   : > { %s2794_s16 = scalar_select %p2404_p6, 1, 0 }
  0x12   : > { %p2409_p8 = pnand %p1729_p5, %p252_p7  ;;  %s2302_s18 = smov [#allocation6]  }
  0x13   : > { %s264_s19 = sshll.u32 %s2302_s18, 4  ;;  %s2303_s21 = smov [#allocation9]   ;;  %s265_s19 = int_to_ptr.vmem [resolvable:$true] %s264_s19 }
  0x14   : > { %s2795_s17 = scalar_select %p2409_p8, 1, 0 }
  0x15   : > { %p1977_p9 = pneg %p2409_p8  ;;  %s296_s22 = sshll.u32 %s2303_s21, 4  ;;  %s297_s22 = int_to_ptr.vmem [resolvable:$true] %s296_s22 }
  0x16   : > { %s2304_s23 = smov [#allocation8]   ;;  %s2107_s25 = scalar_lea.vmem %s265_s19, 256 }
  0x17   : > { %p2417_p10 = pnand %p1977_p9, %p2784_p1  ;;  %s280_s24 = sshll.u32 %s2304_s23, 4  ;;  %s281_s24 = int_to_ptr.vmem [resolvable:$true] %s280_s24 }
  0x18   : > { %p2108_p12 = scmp.ne.s32.totalorder %s265_s19, %s2107_s25  ;;  %p2115_p3 = scmp.lt.s32.totalorder %s265_s19, %s265_s19 }
  0x19   : > { %p2098_p11 = pneg %p2417_p10  ;;  %p2116_p5 = scmp.lt.s32.totalorder %s2107_s25, %s2107_s25 }
  0x1b   : > { %p2110_p13 = pnand %p2108_p12, %p2098_p11  ;;  %p2117_p7 = por %p2116_p5, %p2115_p3 }
  0x1d   : > { %p2111_p0 = pneg %p2110_p13 }
  0x1f   : > { %p2118_p9 = pnand %p2117_p7, %p2111_p0 }
  0x21   : > { %2121 = shalt.err (!%p2118_p9)
}
  0x22   : > { %s2785_s26 = smov 64   ;;  %s2786_s27 = smov 4  }
  0x23   : > { %s2797_s1 = sld [smem:[#allocation17_spill]]  ;;  %s2133_s14 = scalar_lea.vmem %s297_s22, 256 }
  0x24   : > { %p2134_p12 = scmp.ne.s32.totalorder %s297_s22, %s2133_s14  ;;  %p2141_p0 = scmp.lt.s32.totalorder %s297_s22, %s297_s22 }
  0x25   : > { %p2142_p5 = scmp.lt.s32.totalorder %s2133_s14, %s2133_s14 }
  0x26   : > { %p2136_p13 = pnand %p2134_p12, %p2098_p11 }
  0x27   : > { %p2143_p7 = por %p2142_p5, %p2141_p0 }
  0x28   : > { %p2137_p3 = pneg %p2136_p13 }
  0x29   : > { %1980 = dma.hbm_to_vmem [thread:$0]  (!%p2417_p10), %s2797_s1, 256, %s265_s19, [#allocation7], %s2785_s26, %s2785_s26, %s2786_s27  }
  0x2a   : > { %p2144_p9 = pnand %p2143_p7, %p2137_p3 }
  0x2c   : > { %2147 = shalt.err (!%p2144_p9)
}
  0x2d   : > { %s2798_s5 = sld [smem:[#allocation19_spill]]  ;;  %s2159_s19 = scalar_lea.vmem %s281_s24, 256 }
  0x2e   : > { %p2160_p1 = scmp.ne.s32.totalorder %s281_s24, %s2159_s19  ;;  %p2167_p0 = scmp.lt.s32.totalorder %s281_s24, %s281_s24 }
  0x2f   : > { %p2168_p3 = scmp.lt.s32.totalorder %s2159_s19, %s2159_s19 }
  0x30   : > { %p2162_p12 = pnand %p2160_p1, %p2098_p11 }
  0x31   : > { %p2169_p5 = por %p2168_p3, %p2167_p0 }
  0x32   : > { %p2163_p13 = pneg %p2162_p12 }
  0x33   : > { %1986 = dma.hbm_to_vmem [thread:$0]  (!%p2417_p10), %s2798_s5, 256, %s297_s22, [#allocation10], %s2785_s26, %s2785_s26, %s2786_s27  }
  0x34   : > { %p2170_p7 = pnand %p2169_p5, %p2163_p13 }
  0x36   : > { %2173 = shalt.err (!%p2170_p7)
}
  0x37   : > { %s2799_s3 = sld [smem:[#allocation18_spill]]  ;;  %s2307_s22 = smov [#allocation11]  }
  0x38   : > { %s312_s28 = sshll.u32 %s2307_s22, 4  ;;  %s313_s28 = int_to_ptr.vmem [resolvable:$true] %s312_s28 }
  0x39   : > { %s2185_s29 = scalar_lea.vmem %s313_s28, 256  ;;  %p2193_p13 = scmp.lt.s32.totalorder %s313_s28, %s313_s28 }
  0x3a   : > { %p2186_p1 = scmp.ne.s32.totalorder %s313_s28, %s2185_s29  ;;  %p2194_p0 = scmp.lt.s32.totalorder %s2185_s29, %s2185_s29 }
  0x3c   : > { %p2188_p9 = pnand %p2186_p1, %p2098_p11  ;;  %p2195_p3 = por %p2194_p0, %p2193_p13 }
  0x3d   : > { %1983 = dma.hbm_to_vmem [thread:$0]  (!%p2417_p10), %s2799_s3, 256, %s281_s24, [#allocation7], %s2785_s26, %s2785_s26, %s2786_s27  }
  0x3e   : > { %p2189_p12 = pneg %p2188_p9 }
  0x40   : > { %p2196_p5 = pnand %p2195_p3, %p2189_p12 }
  0x42   : > { %2199 = shalt.err (!%p2196_p5)
}
  0x43   : > { %1989 = dma.hbm_to_vmem [thread:$0]  (!%p2417_p10), %s2781_s7, 256, %s313_s28, [#allocation10], %s2785_s26, %s2785_s26, %s2786_s27  }
  0x44   : > { %s2468_s18 = sadd.s32 1, %s2300_s12   ;;  %s34_s20 = sadd.s32 1, %s2296_s11 }
  0x45   : > { %s31_s21 = ssub.s32 %s2300_s12, %s2468_s18  ;;  %p41_p11 = scmp.ne.s32.totalorder %s2296_s11, %s2292_s10 }
  0x46   : > { %p32_p7 = scmp.eq.s32.totalorder %s31_s21, 0  ;;  %p42_p1 = scmp.eq.s32.totalorder %s2300_s12, 0 }
  0x47   : > { %p2478_p9 = por %p239_p2, %p41_p11  ;;  %p2002_p12 = scmp.lt.s32.totalorder %s2300_s12, 4 }
  0x48   : > { %s2484_s23 = scalar_select %p32_p7, %s2296_s11, %s34_s20  }
  0x49   : > { %s2800_s19 = scalar_select %p2478_p9, 1, 0 }
  0x4a   : > { %p43_p13 = por %p42_p1, %p41_p11  ;;  %s329_s25 = sand.u32 1, %s2296_s11  }
  0x4b   : > { %s1735_s22 = sshll.u32 %s329_s25, 3  ;;  %s1783_s28 = sshll.u32 %s2300_s12, 7 }
  0x4c   : > { %s2491_s14 = scalar_lea.hbm %s2774_s0, %s1783_s28  ;;  %s333_s21 = scalar_lea.vmem [#allocation3], %s1735_s22 }
  0x4d   : > { %s340_s26 = sshll.u32 %s333_s21, 4  ;;  %p2495_p2 = pnand %p2002_p12, %p43_p13  ;;  %s2493_s26 = int_to_ptr.vmem [resolvable:$true] %s340_s26 }
  0x4e   : > { %s2499_s20 = scalar_lea.sflag [#allocation4], %s329_s25  ;;  %s2200_s1 = scalar_lea.hbm %s2491_s14, 128 }
  0x4f   : > { %p2201_p10 = scmp.ne.s32.totalorder %s2491_s14, %s2200_s1  ;;  %p2202_p0 = pneg %p2495_p2 }
  0x50   : > { %s2205_s22 = scalar_lea.hbm %s2774_s0, 512  ;;  %p2206_p11 = scmp.lt.s32.totalorder %s2491_s14, %s2774_s0 }
  0x51   : > { %p2203_p3 = pnand %p2202_p0, %p2201_p10  ;;  %p2207_p7 = scmp.lt.s32.totalorder %s2205_s22, %s2200_s1 }
  0x53   : > { %p2204_p5 = pneg %p2203_p3  ;;  %p2208_p1 = por %p2207_p7, %p2206_p11 }
  0x55   : > { %p2209_p12 = pnand %p2208_p1, %p2204_p5 }
  0x57   : > { %2212 = shalt.err (!%p2209_p12)
}
  0x58   : > { %s2213_s25 = scalar_lea.vmem %s2493_s26, 128  ;;  %s2308_s3 = smov [#allocation3]  }
  0x59   : > { %p2214_p13 = scmp.ne.s32.totalorder %s2493_s26, %s2213_s25  ;;  %s2218_s5 = sshll.u32 %s2308_s3, 4  ;;  %s2219_s5 = int_to_ptr.vmem [resolvable:$false] %s2218_s5 }
  0x5a   : > { %s2220_s28 = scalar_lea.vmem %s2219_s5, 256  ;;  %p2221_p3 = scmp.lt.s32.totalorder %s2493_s26, %s2219_s5 }
  0x5b   : > { %p2216_p6 = pnand %p2214_p13, %p2202_p0  ;;  %p2222_p9 = scmp.lt.s32.totalorder %s2220_s28, %s2213_s25 }
  0x5d   : > { %p2217_p10 = pneg %p2216_p6  ;;  %p2223_p4 = por %p2222_p9, %p2221_p3 }
  0x5f   : > { %p2224_p8 = pnand %p2223_p4, %p2217_p10 }
  0x61   : > { %2227 = shalt.err (!%p2224_p8)
}
  0x62   : > { %s2802_s1 = smov 4   ;;  %s2803_s29 = smov 64  }
  0x63   : > { %1993 = dma.hbm_to_vmem [thread:$0]  (!%p2495_p2), %s2491_s14, 128, %s2493_s26, %s2499_s20, %s2803_s29, %s2803_s29, %s2802_s1  }
  0x64   : > { %p2804_p6 = scmp.ne.s32.totalorder %s2795_s17, 0 }
  0x65   : > { %s2526_s3 = sand.u32 (!%p2804_p6), 1, %s2292_s10   ;;  %p2805_p4 = scmp.ne.s32.totalorder (!%p2804_p6), %s2793_s15, 0 }
  0x66   : > { %352 = sbr.rel (%p2804_p6) target bundleno = 1414 (0x586), region = 56  ;;  %s1739_s5 = sshll.u32 (!%p2804_p6), %s2526_s3, 3 }
  0x67   : > { %s355_s22 = scalar_lea.sflag (!%p2804_p6), [#allocation4], %s2526_s3  ;;  %s358_s24 = scalar_lea.vmem (!%p2804_p6), [#allocation3], %s1739_s5 }
  0x6b   : > { %2271 = dma.done.wait (%p2805_p4), %s355_s22, 128  }
  0x6c   : > { %2273 = vsyncadd (%p2805_p4), %s355_s22, 4294967168  ;;  %p2806_p8 = scmp.eq.s32.totalorder %s2390_s13, 0 }
  0x6e   : > { %2275 = dma.done.wait (%p2806_p8), [#allocation7], 512   ;;  %p2807_p9 = pmov %p2806_p8 }
  0x6f   : > { %p2808_p2 = pmov %p2806_p8 }
  0x70   : > { %2277 = vsyncadd (%p2807_p9), [#allocation7], 4294966784 }
  0x71   : > { %2279 = dma.done.wait (%p2808_p2), [#allocation10], 512   ;;  %p2809_p0 = pmov %p2808_p2 }
  0x72   : > { %v2309_v0 = vmov 0.0   ;;  %vm2310_vm0 = vmmov 0   ;;  %v2055_v1 = vld [vmem:[#allocation8 + $0x8] sm:$0xff]   ;;  %v2056_v2 = vld [vmem:[#allocation6 + $0x8] sm:$0xff]   ;;  %v2057_v3 = vld [vmem:[#allocation8] sm:$0xff]   ;;  %vm442_vm1 = vcmask 261120  }
  0x73   : > { %2281 = vsyncadd (%p2809_p0), [#allocation10], 4294966784  ;;  %1837 = vmatprep.subr.bf16.mxu1 %v2309_v0  ;;  %1829 = vmatprep.subr.bf16.mxu0 %v2309_v0  ;;  %v2058_v4 = vld [vmem:[#allocation6] sm:$0xff]   ;;  %v2059_v5 = vld [vmem:[%s358_s24] sm:$0xff]   ;;  %vm620_vm2 = vcmask 64512   ;;  %s2311_s14 = smov 112  }
  0x74   : > { %1841 = vmatprep.mubr.msk.bf16.mxu1 %vm2310_vm0, %v2309_v0  ;;  %1833 = vmatprep.mubr.msk.bf16.mxu0 %vm2310_vm0, %v2309_v0  ;;  %v1745_v6 = vld [vmem:[%s2776_s2] ss:$0 sm:$0xff]  ;;  %v2060_v7 = vld [vmem:[#allocation9 + $0x8] sm:$0xff]   ;;  %s2312_s20 = smov 120   ;;  %s2313_s21 = smov 104   ;;  %vm680_vm3 = vcmask 1043456  }
  0x75   : > { %1838 = vmatpush3.bf16.msra.mxu1 %v2055_v1  ;;  %1830 = vmatpush3.bf16.msra.mxu0 %v2056_v2  ;;  %v1750_v10 = vld [vmem:[%s2778_s4] ss:$0 sm:$0xff]  ;;  %s2314_s1 = smov 8   ;;  %s2315_s29 = smov 16   ;;  %vm844_vm4 = vcmask 130112   ;;  %vm960_vm5 = vcmask 195712  }
  0x76   : > { %1839 = vmatprep.subr.bf16.mxu1 %v2309_v0  ;;  %1831 = vmatprep.subr.bf16.mxu0 %v2309_v0  ;;  %v2061_v15 = vld [vmem:[#allocation9] sm:$0xff]   ;;  %s2316_s5 = smov 24   ;;  %vm1076_vm6 = vcmask 261312   ;;  %s1744_s22 = sshll.u32 %s2526_s3, 4 }
  0x77   : > { %v1754_v48 = vld [vmem:[%s2780_s6] ss:$0 sm:$0xff]  ;;  %s408_s17 = scalar_lea.vmem [#allocation12], %s1744_s22  ;;  %s1784_s27 = sshll.u32 %s2390_s13, 8 }
  0x78   : > { %s1617_s26 = sshll.u32 %s408_s17, 4  ;;  %s1604_s25 = scalar_lea.sflag [#allocation5], %s2526_s3  ;;  %s2725_s26 = int_to_ptr.vmem [resolvable:$true] %s1617_s26 }
  0x79   : > { %1840 = vmatpush3.bf16.msra.mxu1 %v2057_v3  ;;  %1832 = vmatpush3.bf16.msra.mxu0 %v2058_v4  ;;  %s2228_s28 = scalar_lea.vmem %s2725_s26, 256  ;;  %p2810_p11 = scmp.ne.s32.totalorder %s2800_s19, 0 }
  0x7a   : > { %1853 = vmatprep.subr.bf16.mxu1 %v2309_v0  ;;  %1845 = vmatprep.subr.bf16.mxu0 %v2309_v0  ;;  %p2229_p5 = scmp.ne.s32.totalorder %s2725_s26, %s2228_s28  ;;  %s2317_s13 = smov [#allocation12]  }
  0x7c   : > { %1842 = vmatmul.mubr.msk.bf16.vlgmr.msra.gmra.mxu1 %vm442_vm1, %v2059_v5  ;;  %1834 = vmatmul.mubr.msk.bf16.vlgmr.msra.gmra.mxu0 %vm442_vm1, %v2059_v5  ;;  %p2230_p7 = pnand %p2229_p5, %p2810_p11 }
  0x7d   : > { %1855 = vmatprep.mubr.msk.bf16.mxu1 %vm2310_vm0, %v2309_v0  ;;  %1849 = vmatprep.mubr.msk.bf16.mxu0 %vm2310_vm0, %v2309_v0 }
  0x7e   : > { %1846 = vmatpush3.bf16.msra.mxu0 %v2060_v7  ;;  %p2231_p1 = pneg %p2230_p7 }
  0x7f   : > { %1847 = vmatprep.subr.bf16.mxu0 %v2309_v0 }
  0x82   : > { %1848 = vmatpush3.bf16.msra.mxu0 %v2061_v15 }
  0x83   : > { %1859 = vmatprep.subr.bf16.mxu0 %v2309_v0 }
  0x85   : > { %1850 = vmatmul.mubr.msk.bf16.vlgmr.msra.gmra.mxu0 %vm442_vm1, %v2059_v5 }
  0x86   : > { %1861 = vmatprep.mubr.msk.bf16.mxu0 %vm2310_vm0, %v2309_v0 }
 0x13c   : > { %v544_v8 = vpop.f32.mrf.mxu1  ;;  %v480_v9 = vpop.f32.mrf.mxu0 }
 0x13d   : > { %v481_v11 = vadd.f32 %v1745_v6, %v480_v9  ;;  %v545_v16 = vadd.f32 %v1750_v10, %v544_v8 }
 0x13e   : > { %v1843_v12 = vpop.f32.mrf.mxu1  ;;  %v1835_v13 = vpop.f32.mrf.mxu0 }
 0x13f   : > { %v615_v19 = vmul.f32 0.35355338, %v481_v11 }
 0x140   : > { %v547_v14 = vpop.f32.mrf.mxu1  ;;  %v483_v18 = vpop.f32.mrf.mxu0 }
 0x141   : > { %v548_v17 = vadd.f32 %v1750_v10, %v547_v14  ;;  %v484_v20 = vadd.f32 %v1745_v6, %v483_v18 }
 0x142   : > { %v1844_v21 = vpop.f32.mrf.mxu1  ;;  %v1836_v23 = vpop.f32.mrf.mxu0 }
 0x143   : > { %v618_v22 = vpack.c.bf16 %v548_v17, %v545_v16  ;;  %v616_v24 = vmul.f32 0.35355338, %v484_v20 }
 0x145   : > { %848 = vrot.lane.b32.xlu1 %v618_v22, %s2311_s14  ;;  %731 = vrot.lane.b32.xlu0 %v618_v22, %s2312_s20  ;;  %v625_v25 = vsel %vm620_vm2, %v618_v22, 0  ;;  %v617_v26 = vpack.c.bf16 %v616_v24, %v615_v19  ;;  %v1079_v27 = vrot.slane %v618_v22, 4  ;;  %v608_v49 = vpop.f32.mrf.mxu0 }
 0x146   : > { %1854 = vmatpush3.bf16.xpose.msra.mxu1 %v625_v25  ;;  %v609_v51 = vadd.f32 %v1754_v48, %v608_v49 }
 0x147   : > { %1865 = vmatprep.subr.bf16.mxu1 %v2309_v0  ;;  %v1078_v28 = vrot.slane %v617_v26, 4  ;;  %v1084_v38 = vsel %vm620_vm2, %v1079_v27, 0  ;;  %v1851_v50 = vpop.f32.mrf.mxu0 }
 0x149   : > { %846 = vrot.lane.b32.xlu1 %v617_v26, %s2311_s14  ;;  %728 = vrot.lane.b32.xlu0 %v617_v26, %s2312_s20  ;;  %v611_v52 = vpop.f32.mrf.mxu0 }
 0x14a   : > { %v612_v53 = vadd.f32 %v1754_v48, %v611_v52 }
 0x14b   : > { %v1852_v54 = vpop.f32.mrf.mxu0 }
 0x14c   : > { %v2624_v55 = vpack.c.bf16 %v612_v53, %v609_v51 }
 0x14d   : > { %962 = vrot.lane.b32.xlu1 %v617_v26, %s2313_s21  ;;  %964 = vrot.lane.b32.xlu0 %v618_v22, %s2313_s21 }
 0x14e   : > { %1856 = vmatmul.mubr.msk.bf16.vlgmr.msra.gmra.mxu1 %vm620_vm2, %v617_v26  ;;  %v682_v59 = vsel %vm680_vm3, %v2624_v55, 0 }
 0x14f   : > { %1867 = vmatprep.mubr.msk.bf16.mxu1 %vm2310_vm0, %v2309_v0  ;;  %1860 = vmatpush3.bf16.msra.mxu0 %v682_v59 }
 0x150   : > { %1871 = vmatprep.subr.bf16.mxu0 %v2309_v0 }
 0x151   : > { %1188 = vrot.lane.b32.xlu0 %v1079_v27, %s2312_s20  ;;  %1186 = vrot.lane.b32.xlu1 %v1078_v28, %s2312_s20 }
 0x155   : > { %1303 = vrot.lane.b32.xlu0 %v1079_v27, %s2311_s14  ;;  %1301 = vrot.lane.b32.xlu1 %v1078_v28, %s2311_s14 }
 0x159   : > { %1418 = vrot.lane.b32.xlu0 %v1079_v27, %s2313_s21  ;;  %1416 = vrot.lane.b32.xlu1 %v1078_v28, %s2313_s21 }
 0x1b7   : > { %v732_v29 = vpop.permute.xlu0 %731  ;;  %v849_v31 = vpop.permute.xlu1 %848 }
 0x1b8   : > { %v737_v30 = vsel %vm620_vm2, %v732_v29, 0  ;;  %v854_v33 = vsel %vm620_vm2, %v849_v31, 0 }
 0x1b9   : > { %1866 = vmatpush3.bf16.xpose.msra.mxu1 %v737_v30 }
 0x1ba   : > { %1877 = vmatprep.subr.bf16.mxu1 %v2309_v0 }
 0x1bb   : > { %v729_v32 = vpop.permute.xlu0 %728  ;;  %v847_v35 = vpop.permute.xlu1 %846 }
 0x1bf   : > { %v965_v34 = vpop.permute.xlu0 %964  ;;  %v963_v37 = vpop.permute.xlu1 %962 }
 0x1c0   : > { %1868 = vmatmul.mubr.msk.bf16.vlgmr.msra.gmra.mxu1 %vm620_vm2, %v729_v32  ;;  %v970_v36 = vsel %vm620_vm2, %v965_v34, 0 }
 0x1c1   : > { %1878 = vmatpush3.bf16.xpose.msra.mxu1 %v854_v33  ;;  %1879 = vmatprep.mubr.msk.bf16.mxu1 %vm2310_vm0, %v2309_v0 }
 0x1c2   : > { %1889 = vmatprep.subr.bf16.mxu1 %v2309_v0 }
 0x1c3   : > { %v1189_v39 = vpop.permute.xlu0 %1188  ;;  %v1187_v42 = vpop.permute.xlu1 %1186 }
 0x1c4   : > { %v1194_v40 = vsel %vm620_vm2, %v1189_v39, 0  ;;  %v1136_v39 = vrot.slane %v2624_v55, 4 }
 0x1c7   : > { %v1304_v41 = vpop.permute.xlu0 %1303  ;;  %v1302_v45 = vpop.permute.xlu1 %1301 }
 0x1c8   : > { %1880 = vmatmul.mubr.msk.bf16.vlgmr.msra.gmra.mxu1 %vm620_vm2, %v847_v35  ;;  %v1309_v43 = vsel %vm620_vm2, %v1304_v41, 0 }
 0x1c9   : > { %1890 = vmatpush3.bf16.xpose.msra.mxu1 %v970_v36  ;;  %1891 = vmatprep.mubr.msk.bf16.mxu1 %vm2310_vm0, %v2309_v0 }
 0x1ca   : > { %1901 = vmatprep.subr.bf16.mxu1 %v2309_v0 }
 0x1cb   : > { %v1419_v44 = vpop.permute.xlu0 %1418  ;;  %v1417_v47 = vpop.permute.xlu1 %1416 }
 0x1cc   : > { %v1424_v46 = vsel %vm620_vm2, %v1419_v44, 0 }
 0x1d0   : > { %1892 = vmatmul.mubr.msk.bf16.vlgmr.msra.gmra.mxu1 %vm620_vm2, %v963_v37 }
 0x1d1   : > { %1902 = vmatpush3.bf16.xpose.msra.mxu1 %v1084_v38  ;;  %1903 = vmatprep.mubr.msk.bf16.mxu1 %vm2310_vm0, %v2309_v0 }
 0x1d2   : > { %1913 = vmatprep.subr.bf16.mxu1 %v2309_v0 }
 0x1d8   : > { %1904 = vmatmul.mubr.msk.bf16.vlgmr.msra.gmra.mxu1 %vm620_vm2, %v1078_v28 }
 0x1d9   : > { %1914 = vmatpush3.bf16.xpose.msra.mxu1 %v1194_v40  ;;  %1915 = vmatprep.mubr.msk.bf16.mxu1 %vm2310_vm0, %v2309_v0 }
 0x1da   : > { %1925 = vmatprep.subr.bf16.mxu1 %v2309_v0 }
 0x1e0   : > { %1916 = vmatmul.mubr.msk.bf16.vlgmr.msra.gmra.mxu1 %vm620_vm2, %v1187_v42 }
 0x1e1   : > { %1926 = vmatpush3.bf16.xpose.msra.mxu1 %v1309_v43  ;;  %1927 = vmatprep.mubr.msk.bf16.mxu1 %vm2310_vm0, %v2309_v0 }
 0x1e2   : > { %1937 = vmatprep.subr.bf16.mxu1 %v2309_v0 }
 0x1e8   : > { %1928 = vmatmul.mubr.msk.bf16.vlgmr.msra.gmra.mxu1 %vm620_vm2, %v1302_v45 }
 0x1e9   : > { %1938 = vmatpush3.bf16.xpose.msra.mxu1 %v1424_v46  ;;  %1939 = vmatprep.mubr.msk.bf16.mxu1 %vm2310_vm0, %v2309_v0 }
 0x1ea   : > { %1949 = vmatprep.subr.bf16.mxu1 %v2309_v0 }
 0x1f0   : > { %1940 = vmatmul.mubr.msk.bf16.vlgmr.msra.gmra.mxu1 %vm620_vm2, %v1417_v47 }
 0x1f1   : > { %1953 = vmatprep.mubr.msk.bf16.mxu1 %vm2310_vm0, %v2309_v0 }
 0x20e   : > { %v661_v56 = vpop.f32.mrf.mxu1 }
 0x20f   : > { %v667_v57 = vsel %vm620_vm2, %v661_v56, -inf }
 0x210   : > { %668 = vmax.xlane.f32.xlu0 %v667_v57  ;;  %v1857_v58 = vpop.f32.mrf.mxu1 }
 0x212   : > { %v664_v60 = vpop.f32.mrf.mxu1 }
 0x214   : > { %v1858_v61 = vpop.f32.mrf.mxu1 }
 0x280   : > { %v773_v62 = vpop.f32.mrf.mxu1 }
 0x281   : > { %v779_v63 = vsel %vm620_vm2, %v773_v62, -inf }
 0x282   : > { %780 = vmax.xlane.f32.xlu1 %v779_v63  ;;  %v1869_v1 = vpop.f32.mrf.mxu1  ;;  %v1141_v63 = vsel %vm680_vm3, %v1136_v39, 0 }
 0x284   : > { %v776_v2 = vpop.f32.mrf.mxu1 }
 0x286   : > { %v1870_v3 = vpop.f32.mrf.mxu1 }
 0x288   : > { %v890_v4 = vpop.f32.mrf.mxu1 }
 0x289   : > { %v896_v5 = vsel %vm620_vm2, %v890_v4, -inf }
 0x28a   : > { %897 = vmax.xlane.f32.xlu0 %v896_v5  ;;  %v1881_v6 = vpop.f32.mrf.mxu1 }
 0x28c   : > { %v893_v7 = vpop.f32.mrf.mxu1 }
 0x28e   : > { %v1882_v8 = vpop.f32.mrf.mxu1 }
 0x290   : > { %v1006_v9 = vpop.f32.mrf.mxu1 }
 0x291   : > { %v1012_v10 = vsel %vm620_vm2, %v1006_v9, -inf }
 0x292   : > { %1013 = vmax.xlane.f32.xlu0 %v1012_v10  ;;  %v1893_v11 = vpop.f32.mrf.mxu1 }
 0x293   : > { %906 = vrot.lane.b32.xlu1 %v2624_v55, %s2311_s14 }
 0x294   : > { %v1009_v12 = vpop.f32.mrf.mxu1 }
 0x296   : > { %v1894_v13 = vpop.f32.mrf.mxu1 }
 0x297   : > { %1022 = vrot.lane.b32.xlu1 %v2624_v55, %s2313_s21 }
 0x298   : > { %v2637_v14 = vpop.f32.mrf.mxu1 }
 0x299   : > { %v669_v15 = vpop.xlane.xlu0 %668  ;;  %v1126_v35 = vsel %vm620_vm2, %v2637_v14, -inf }
 0x29a   : > { %v670_v16 = vsub.f32 %v661_v56, %v669_v15  ;;  %v1905_v17 = vpop.f32.mrf.mxu1 }
 0x29c   : > { %v671_v18 = vmul.f32 1.442695, %v670_v16  ;;  %v1123_v19 = vpop.f32.mrf.mxu1 }
 0x29e   : > { %2064 = vpow2.f32 %v671_v18  ;;  %v1906_v20 = vpop.f32.mrf.mxu1 }
 0x2a0   : > { %v2639_v21 = vpop.f32.mrf.mxu1 }
 0x2a1   : > { %v1236_v36 = vsel %vm620_vm2, %v2639_v21, -inf }
 0x2a2   : > { %v1917_v22 = vpop.f32.mrf.mxu1 }
 0x2a4   : > { %v1233_v23 = vpop.f32.mrf.mxu1 }
 0x2a6   : > { %v1918_v24 = vpop.f32.mrf.mxu1 }
 0x2a8   : > { %v2641_v25 = vpop.f32.mrf.mxu1  ;;  %790 = vrot.lane.b32.xlu0 %v2624_v55, %s2312_s20 }
 0x2a9   : > { %v1351_v38 = vsel %vm620_vm2, %v2641_v25, -inf }
 0x2aa   : > { %v1929_v26 = vpop.f32.mrf.mxu1 }
 0x2ab   : > { %v2645_v27 = vpop.eup %2064 }
 0x2ac   : > { %v1348_v28 = vpop.f32.mrf.mxu1  ;;  %v676_v29 = vpack.c.bf16 %v2645_v27, %v2645_v27  ;;  %v673_v24 = vsel %vm620_vm2, %v2645_v27, 0.0 }
 0x2ae   : > { %1862 = vmatmul.mubr.msk.bf16.vlgmr.msra.gmra.mxu0 %vm620_vm2, %v676_v29  ;;  %v1930_v30 = vpop.f32.mrf.mxu1 }
 0x2af   : > { %1873 = vmatprep.mubr.msk.bf16.mxu0 %vm2310_vm0, %v2309_v0 }
 0x2b0   : > { %v2652_v31 = vpop.f32.mrf.mxu1 }
 0x2b1   : > { %v1466_v37 = vsel %vm620_vm2, %v2652_v31, -inf }
 0x2b2   : > { %v1941_v32 = vpop.f32.mrf.mxu1 }
 0x2b4   : > { %v1463_v33 = vpop.f32.mrf.mxu1 }
 0x2b6   : > { %v1942_v34 = vpop.f32.mrf.mxu1 }
 0x2bb   : > { %1127 = vmax.xlane.f32.xlu1 %v1126_v35 }
 0x2bf   : > { %1237 = vmax.xlane.f32.xlu1 %v1236_v36 }
 0x2c3   : > { %1467 = vmax.xlane.f32.xlu1 %v1466_v37 }
 0x2c7   : > { %1352 = vmax.xlane.f32.xlu0 %v1351_v38 }
 0x2d4   : > { %1361 = vrot.lane.b32.xlu1 %v1136_v39, %s2311_s14 }
 0x2dd   : > { %1246 = vrot.lane.b32.xlu0 %v1136_v39, %s2312_s20 }
 0x2e1   : > { %1476 = vrot.lane.b32.xlu0 %v1136_v39, %s2313_s21  ;;  %s2730_s21 = scalar_lea.hbm %s2783_s9, %s1784_s27 }
 0x30b   : > { %v781_v40 = vpop.xlane.xlu1 %780 }
 0x30c   : > { %v782_v41 = vsub.f32 %v773_v62, %v781_v40 }
 0x30e   : > { %v783_v42 = vmul.f32 1.442695, %v782_v41 }
 0x30f   : > { %v907_v53 = vpop.permute.xlu1 %906 }
 0x310   : > { %2066 = vpow2.f32 %v783_v42  ;;  %v912_v55 = vsel %vm680_vm3, %v907_v53, 0 }
 0x313   : > { %v898_v43 = vpop.xlane.xlu0 %897  ;;  %v1023_v58 = vpop.permute.xlu1 %1022 }
 0x314   : > { %v899_v44 = vsub.f32 %v890_v4, %v898_v43  ;;  %v1028_v60 = vsel %vm680_vm3, %v1023_v58, 0 }
 0x316   : > { %v900_v45 = vmul.f32 1.442695, %v899_v44 }
 0x318   : > { %2068 = vpow2.f32 %v900_v45 }
 0x31b   : > { %v1014_v46 = vpop.xlane.xlu0 %1013 }
 0x31c   : > { %v1015_v47 = vsub.f32 %v1006_v9, %v1014_v46 }
 0x31d   : > { %v2067_v48 = vpop.eup %2066 }
 0x31e   : > { %v1016_v49 = vmul.f32 1.442695, %v1015_v47  ;;  %v785_v50 = vsel %vm620_vm2, %v2067_v48, 0.0  ;;  %v788_v54 = vpack.c.bf16 %v2067_v48, %v2067_v48 }
 0x31f   : > { %v791_v51 = vpop.permute.xlu0 %790  ;;  %786 = vadd.xlane.f32.xlu0 %v785_v50 }
 0x320   : > { %v796_v52 = vsel %vm680_vm3, %v791_v51, 0  ;;  %2070 = vpow2.f32 %v1016_v49 }
 0x321   : > { %1872 = vmatpush3.bf16.msra.mxu0 %v796_v52 }
 0x322   : > { %1883 = vmatprep.subr.bf16.mxu0 %v2309_v0 }
 0x324   : > { %1874 = vmatmul.mubr.msk.bf16.vlgmr.msra.gmra.mxu0 %vm620_vm2, %v788_v54 }
 0x325   : > { %v2069_v56 = vpop.eup %2068  ;;  %1884 = vmatpush3.bf16.msra.mxu0 %v912_v55  ;;  %1885 = vmatprep.mubr.msk.bf16.mxu0 %vm2310_vm0, %v2309_v0 }
 0x326   : > { %v902_v57 = vsel %vm620_vm2, %v2069_v56, 0.0  ;;  %1895 = vmatprep.subr.bf16.mxu0 %v2309_v0  ;;  %v905_v59 = vpack.c.bf16 %v2069_v56, %v2069_v56 }
 0x327   : > { %903 = vadd.xlane.f32.xlu0 %v902_v57 }
 0x32c   : > { %1886 = vmatmul.mubr.msk.bf16.vlgmr.msra.gmra.mxu0 %vm620_vm2, %v905_v59 }
 0x32d   : > { %1896 = vmatpush3.bf16.msra.mxu0 %v1028_v60  ;;  %1897 = vmatprep.mubr.msk.bf16.mxu0 %vm2310_vm0, %v2309_v0  ;;  %v2071_v61 = vpop.eup %2070 }
 0x32e   : > { %1907 = vmatprep.subr.bf16.mxu0 %v2309_v0  ;;  %v1021_v62 = vpack.c.bf16 %v2071_v61, %v2071_v61  ;;  %v1018_v20 = vsel %vm620_vm2, %v2071_v61, 0.0 }
 0x334   : > { %1898 = vmatmul.mubr.msk.bf16.vlgmr.msra.gmra.mxu0 %vm620_vm2, %v1021_v62 }
 0x335   : > { %1908 = vmatpush3.bf16.msra.mxu0 %v1141_v63  ;;  %1909 = vmatprep.mubr.msk.bf16.mxu0 %vm2310_vm0, %v2309_v0 }
 0x336   : > { %1919 = vmatprep.subr.bf16.mxu0 %v2309_v0 }
 0x344   : > { %v1128_v1 = vpop.xlane.xlu1 %1127 }
 0x345   : > { %v1129_v2 = vsub.f32 %v2637_v14, %v1128_v1 }
 0x347   : > { %v1130_v3 = vmul.f32 1.442695, %v1129_v2 }
 0x348   : > { %v1238_v4 = vpop.xlane.xlu1 %1237 }
 0x349   : > { %2072 = vpow2.f32 %v1130_v3  ;;  %v1239_v5 = vsub.f32 %v2639_v21, %v1238_v4 }
 0x34b   : > { %v1240_v6 = vmul.f32 1.442695, %v1239_v5 }
 0x34c   : > { %v1468_v7 = vpop.xlane.xlu1 %1467 }
 0x34d   : > { %2074 = vpow2.f32 %v1240_v6  ;;  %v1469_v8 = vsub.f32 %v2652_v31, %v1468_v7 }
 0x34f   : > { %v1470_v11 = vmul.f32 1.442695, %v1469_v8 }
 0x350   : > { %v1353_v9 = vpop.xlane.xlu0 %1352  ;;  %v1362_v19 = vpop.permute.xlu1 %1361 }
 0x351   : > { %v1354_v10 = vsub.f32 %v2641_v25, %v1353_v9  ;;  %v1367_v22 = vsel %vm680_vm3, %v1362_v19, 0 }
 0x353   : > { %v1355_v12 = vmul.f32 1.442695, %v1354_v10 }
 0x354   : > { %v1247_v15 = vpop.permute.xlu0 %1246 }
 0x355   : > { %2076 = vpow2.f32 %v1355_v12  ;;  %v1252_v16 = vsel %vm680_vm3, %v1247_v15, 0  ;;  %v2062_v15 = vld [vmem:[#allocation11 + $0x8] sm:$0xff]  }
 0x356   : > { %v2073_v13 = vpop.eup %2072  ;;  %2078 = vpow2.f32 %v1470_v11  ;;  %1950 = vmatpush3.bf16.msra.mxu1 %v2062_v15 }
 0x357   : > { %v1135_v14 = vpack.c.bf16 %v2073_v13, %v2073_v13  ;;  %v1132_v27 = vsel %vm620_vm2, %v2073_v13, 0.0  ;;  %1951 = vmatprep.subr.bf16.mxu1 %v2309_v0 }
 0x358   : > { %v1477_v28 = vpop.permute.xlu0 %1476 }
 0x359   : > { %1910 = vmatmul.mubr.msk.bf16.vlgmr.msra.gmra.mxu0 %vm620_vm2, %v1135_v14  ;;  %v1482_v31 = vsel %vm680_vm3, %v1477_v28, 0 }
 0x35a   : > { %v2075_v17 = vpop.eup %2074  ;;  %1920 = vmatpush3.bf16.msra.mxu0 %v1252_v16  ;;  %1921 = vmatprep.mubr.msk.bf16.mxu0 %vm2310_vm0, %v2309_v0 }
 0x35b   : > { %v1242_v18 = vsel %vm620_vm2, %v2075_v17, 0.0  ;;  %1931 = vmatprep.subr.bf16.mxu0 %v2309_v0  ;;  %v1245_v21 = vpack.c.bf16 %v2075_v17, %v2075_v17  ;;  %v2063_v17 = vld [vmem:[#allocation11] sm:$0xff]  }
 0x35c   : > { %1243 = vadd.xlane.f32.xlu1 %v1242_v18  ;;  %1952 = vmatpush3.bf16.msra.mxu1 %v2063_v17 }
 0x360   : > { %1019 = vadd.xlane.f32.xlu1 %v1018_v20 }
 0x361   : > { %1922 = vmatmul.mubr.msk.bf16.vlgmr.msra.gmra.mxu0 %vm620_vm2, %v1245_v21 }
 0x362   : > { %v2077_v23 = vpop.eup %2076  ;;  %1932 = vmatpush3.bf16.msra.mxu0 %v1367_v22  ;;  %1933 = vmatprep.mubr.msk.bf16.mxu0 %vm2310_vm0, %v2309_v0 }
 0x363   : > { %v1357_v25 = vsel %vm620_vm2, %v2077_v23, 0.0  ;;  %1943 = vmatprep.subr.bf16.mxu0 %v2309_v0  ;;  %v2079_v26 = vpop.eup %2078  ;;  %v1360_v30 = vpack.c.bf16 %v2077_v23, %v2077_v23 }
 0x364   : > { %674 = vadd.xlane.f32.xlu1 %v673_v24  ;;  %1358 = vadd.xlane.f32.xlu0 %v1357_v25  ;;  %v1472_v29 = vsel %vm620_vm2, %v2079_v26, 0.0  ;;  %v1475_v33 = vpack.c.bf16 %v2079_v26, %v2079_v26 }
 0x368   : > { %1473 = vadd.xlane.f32.xlu0 %v1472_v29 }
 0x369   : > { %1934 = vmatmul.mubr.msk.bf16.vlgmr.msra.gmra.mxu0 %vm620_vm2, %v1360_v30 }
 0x36a   : > { %1944 = vmatpush3.bf16.msra.mxu0 %v1482_v31  ;;  %1945 = vmatprep.mubr.msk.bf16.mxu0 %vm2310_vm0, %v2309_v0 }
 0x36c   : > { %1133 = vadd.xlane.f32.xlu0 %v1132_v27 }
 0x36e   : > { %v718_v32 = vpop.f32.mrf.mxu0 }
 0x370   : > { %v1863_v34 = vpop.f32.mrf.mxu0 }
 0x371   : > { %1946 = vmatmul.mubr.msk.bf16.vlgmr.msra.gmra.mxu0 %vm620_vm2, %v1475_v33 }
 0x372   : > { %v721_v35 = vpop.f32.mrf.mxu0 }
 0x374   : > { %v1864_v36 = vpop.f32.mrf.mxu0 }
 0x375   : > { %v1774_v36 = vld [vmem:[%s2782_s8] ss:$0 sm:$0xff] }
 0x3a8   : > { %v787_v37 = vpop.xlane.xlu0 %786 }
 0x3a9   : > { %2080 = vrcp.f32 %v787_v37 }
 0x3b0   : > { %v904_v38 = vpop.xlane.xlu0 %903 }
 0x3b1   : > { %2082 = vrcp.f32 %v904_v38 }
 0x3b6   : > { %v2081_v39 = vpop.eup %2080 }
 0x3be   : > { %v2083_v47 = vpop.eup %2082 }
 0x3e4   : > { %v832_v40 = vpop.f32.mrf.mxu0 }
 0x3e5   : > { %v839_v41 = vmul.f32 %v2081_v39, %v832_v40  ;;  %v1244_v42 = vpop.xlane.xlu1 %1243 }
 0x3e6   : > { %v1875_v43 = vpop.f32.mrf.mxu0 }
 0x3e7   : > { %841 = vrot.lane.b32.xlu1 %v839_v41, %s2314_s1 }
 0x3e8   : > { %v835_v44 = vpop.f32.mrf.mxu0 }
 0x3e9   : > { %v1020_v45 = vpop.xlane.xlu1 %1019 }
 0x3ea   : > { %v1876_v46 = vpop.f32.mrf.mxu0 }
 0x3ec   : > { %v948_v48 = vpop.f32.mrf.mxu0 }
 0x3ed   : > { %v955_v49 = vmul.f32 %v2083_v47, %v948_v48  ;;  %v675_v50 = vpop.xlane.xlu1 %674  ;;  %v1359_v60 = vpop.xlane.xlu0 %1358 }
 0x3ee   : > { %2084 = vrcp.f32 %v675_v50  ;;  %v1887_v51 = vpop.f32.mrf.mxu0 }
 0x3ef   : > { %957 = vrot.lane.b32.xlu1 %v955_v49, %s2315_s29 }
 0x3f0   : > { %v951_v52 = vpop.f32.mrf.mxu0 }
 0x3f1   : > { %v1474_v61 = vpop.xlane.xlu0 %1473 }
 0x3f2   : > { %v1888_v53 = vpop.f32.mrf.mxu0 }
 0x3f4   : > { %v1064_v54 = vpop.f32.mrf.mxu0 }
 0x3f5   : > { %v1134_v62 = vpop.xlane.xlu0 %1133 }
 0x3f6   : > { %v1899_v55 = vpop.f32.mrf.mxu0  ;;  %2086 = vrcp.f32 %v1134_v62 }
 0x3f7   : > { %2088 = vrcp.f32 %v1244_v42 }
 0x3f8   : > { %v1067_v56 = vpop.f32.mrf.mxu0  ;;  %2090 = vrcp.f32 %v1020_v45 }
 0x3f9   : > { %2092 = vrcp.f32 %v1359_v60 }
 0x3fa   : > { %v1900_v57 = vpop.f32.mrf.mxu0  ;;  %2094 = vrcp.f32 %v1474_v61 }
 0x3fb   : > { %v2085_v58 = vpop.eup %2084 }
 0x3fc   : > { %v725_v59 = vmul.f32 %v2085_v58, %v718_v32 }
 0x3fe   : > { %726 = vst.msk [vmem:[#allocation2] sm:$0xff] %vm620_vm2, %v725_v59 }
 0x403   : > { %v2087_v63 = vpop.eup %2086 }
 0x404   : > { %v2089_v6 = vpop.eup %2088 }
 0x405   : > { %v2091_v9 = vpop.eup %2090 }
 0x406   : > { %v1071_v12 = vmul.f32 %v2091_v9, %v1064_v54  ;;  %v2093_v14 = vpop.eup %2092 }
 0x407   : > { %v2095_v22 = vpop.eup %2094 }
 0x419   : > { %v1177_v1 = vpop.f32.mrf.mxu0 }
 0x41a   : > { %v1184_v2 = vmul.f32 %v2087_v63, %v1177_v1 }
 0x41b   : > { %v1911_v3 = vpop.f32.mrf.mxu0 }
 0x41c   : > { %1185 = vst.msk [vmem:[#allocation2 + $0x8] sm:$0xff] %vm620_vm2, %v1184_v2 }
 0x41d   : > { %v1180_v4 = vpop.f32.mrf.mxu0 }
 0x41f   : > { %v1912_v5 = vpop.f32.mrf.mxu0 }
 0x421   : > { %v1288_v7 = vpop.f32.mrf.mxu0 }
 0x422   : > { %v1295_v8 = vmul.f32 %v2089_v6, %v1288_v7 }
 0x423   : > { %v1923_v10 = vpop.f32.mrf.mxu0 }
 0x424   : > { %1297 = vrot.lane.b32.xlu0 %v1295_v8, %s2314_s1 }
 0x425   : > { %v1291_v11 = vpop.f32.mrf.mxu0 }
 0x427   : > { %v1924_v13 = vpop.f32.mrf.mxu0 }
 0x428   : > { %1073 = vrot.lane.b32.xlu0 %v1071_v12, %s2316_s5 }
 0x429   : > { %v1403_v16 = vpop.f32.mrf.mxu0 }
 0x42a   : > { %v1410_v18 = vmul.f32 %v2093_v14, %v1403_v16 }
 0x42b   : > { %v1935_v19 = vpop.f32.mrf.mxu0 }
 0x42c   : > { %1412 = vrot.lane.b32.xlu1 %v1410_v18, %s2315_s29  ;;  %s2232_s29 = sshll.u32 %s2317_s13, 4  ;;  %s2233_s29 = int_to_ptr.vmem [resolvable:$false] %s2232_s29 }
 0x42d   : > { %v1406_v20 = vpop.f32.mrf.mxu0  ;;  %p2235_p12 = scmp.lt.s32.totalorder %s2725_s26, %s2233_s29 }
 0x42f   : > { %v1936_v21 = vpop.f32.mrf.mxu0 }
 0x431   : > { %v1518_v23 = vpop.f32.mrf.mxu0 }
 0x432   : > { %v1525_v24 = vmul.f32 %v2095_v22, %v1518_v23 }
 0x433   : > { %v1947_v25 = vpop.f32.mrf.mxu0 }
 0x434   : > { %1527 = vrot.lane.b32.xlu1 %v1525_v24, %s2316_s5  ;;  %s2234_s5 = scalar_lea.vmem %s2233_s29, 512 }
 0x435   : > { %v1521_v26 = vpop.f32.mrf.mxu0  ;;  %p2236_p13 = scmp.lt.s32.totalorder %s2234_s5, %s2228_s28 }
 0x437   : > { %v1948_v28 = vpop.f32.mrf.mxu0  ;;  %p2237_p10 = por %p2236_p13, %p2235_p12 }
 0x439   : > { %p2238_p3 = pnand %p2237_p10, %p2231_p1 }
 0x459   : > { %v842_v29 = vpop.permute.xlu1 %841 }
 0x45a   : > { %845 = vst.msk [vmem:[#allocation2] sm:$0xff] %vm844_vm4, %v842_v29 }
 0x461   : > { %v958_v30 = vpop.permute.xlu1 %957 }
 0x462   : > { %961 = vst.msk [vmem:[#allocation2] sm:$0xff] %vm960_vm5, %v958_v30 }
 0x496   : > { %v1298_v0 = vpop.permute.xlu0 %1297 }
 0x497   : > { %1300 = vst.msk [vmem:[#allocation2 + $0x8] sm:$0xff] %vm844_vm4, %v1298_v0 }
 0x49a   : > { %v1074_v31 = vpop.permute.xlu0 %1073 }
 0x49b   : > { %1077 = vst.msk [vmem:[#allocation2] sm:$0xff] %vm1076_vm6, %v1074_v31 }
 0x49e   : > { %v1413_v27 = vpop.permute.xlu1 %1412 }
 0x49f   : > { %1415 = vst.msk [vmem:[#allocation2 + $0x8] sm:$0xff] %vm960_vm5, %v1413_v27 }
 0x4a2   : > { %v1531_v33 = vld [vmem:[#allocation2] sm:$0xff] }
 0x4a6   : > { %v1528_v32 = vpop.permute.xlu1 %1527 }
 0x4a7   : > { %1530 = vst.msk [vmem:[#allocation2 + $0x8] sm:$0xff] %vm1076_vm6, %v1528_v32 }
 0x4ae   : > { %v1532_v34 = vld [vmem:[#allocation2 + $0x8] sm:$0xff] }
 0x4af   : > { %v1533_v35 = vpack.c.bf16 %v1532_v34, %v1531_v33 }
 0x4b1   : > { %1954 = vmatmul.mubr.msk.bf16.vlgmr.msra.gmra.mxu1 %vm442_vm1, %v1533_v35 }
 0x571   : > { %v1594_v37 = vpop.f32.mrf.mxu1 }
 0x572   : > { %v1595_v38 = vadd.f32 %v1774_v36, %v1594_v37 }
 0x573   : > { %v1955_v39 = vpop.f32.mrf.mxu1 }
 0x574   : > { %1601 = vst.msk [vmem:[%s408_s17] sm:$0xff] %vm442_vm1, %v1595_v38 }
 0x575   : > { %v1597_v40 = vpop.f32.mrf.mxu1 }
 0x576   : > { %v1598_v41 = vadd.f32 %v1774_v36, %v1597_v40 }
 0x577   : > { %v1956_v42 = vpop.f32.mrf.mxu1 }
 0x578   : > { %1602 = vst.msk [vmem:[%s408_s17 + $0x8] sm:$0xff] %vm442_vm1, %v1598_v41 }
 0x579   : > { %2241 = shalt.err (!%p2238_p3)
}
 0x57a   : > { %s2242_s22 = scalar_lea.hbm %s2730_s21, 256  ;;  %s2246_s17 = scalar_lea.hbm %s2783_s9, 1024 }
 0x57b   : > { %p2243_p6 = scmp.ne.s32.totalorder %s2730_s21, %s2242_s22  ;;  %p2247_p9 = scmp.lt.s32.totalorder %s2730_s21, %s2783_s9 }
 0x57c   : > { %p2248_p2 = scmp.lt.s32.totalorder %s2246_s17, %s2242_s22 }
 0x57d   : > { %p2244_p4 = pnand %p2243_p6, %p2810_p11 }
 0x57e   : > { %p2249_p0 = por %p2248_p2, %p2247_p9 }
 0x57f   : > { %p2245_p8 = pneg %p2244_p4 }
 0x581   : > { %p2250_p5 = pnand %p2249_p0, %p2245_p8 }
 0x583   : > { %2253 = shalt.err (!%p2250_p5)
}
 0x584   : > { %s2318_s20 = smov 128  }
 0x585   : > { %1975 = dma.vmem_to_hbm [thread:$0]  (%p2810_p11), %s2725_s26, 256, %s2730_s21, %s1604_s25, %s2318_s20, %s2318_s20, %s2314_s1  }
 0x586 PF: > { %p2007_p7 = scmp.ge.s32.totalorder %s2300_s12, 2  ;;  %s1632_s28 = sand.u32 1, %s2288_s30  }
 0x587   : > { %p2811_p1 = scmp.ne.s32.totalorder %s2794_s16, 0  ;;  %s1633_s13 = scalar_lea.sflag [#allocation5], %s1632_s28 }
 0x589   : > { %p1995_p12 = pnand %p2007_p7, %p2811_p1 }
 0x58b   : > { %p1996_p13 = pneg %p1995_p12 }
 0x58d   : > { %2283 = dma.done.wait (%p1996_p13), %s1633_s13, 256  }
 0x58e   : > { %2285 = vsyncadd (%p1996_p13), %s1633_s13, 4294967040  ;;  %p24_p10 = scmp.ge.s32.totalorder %s2468_s18, 6   ;;  %s2812_s30 = smov %s2292_s10 }
 0x58f   : > { %s2813_s10 = smov %s2296_s11  ;;  %s2814_s11 = smov %s2484_s23 }
 0x590   : > { %s2815_s12 = smov %s2468_s18  ;;  %26 = sbr.rel (!%p24_p10) target bundleno = 11 (0xb), region = 117 }
 0x595   :  { %1638 = vsyncpa [#allocation4], 1 }
 0x596   :  { %1640 = vsyncpa [#allocation4 + $0x1], 1 }
 0x597   :  { %1641 = vsyncpa [#allocation7], 1 }
 0x598   :  { %1642 = vsyncpa [#allocation10], 1 }
 0x599   :  { %1643 = vsyncpa [#allocation5], 1 }
 0x59a   :  { %1645 = vsyncpa [#allocation5 + $0x1], 1 }

</bundles_post_ra>
